<compile_context>
chip_gen: v5e
topology: v5e:2x2
jax: 0.10.0
libtpu: 0.0.40
codegen_flags: <defaults>
</compile_context>

<pallas_src>
import jax
import jax.numpy as jnp
import numpy as np
from jax import lax
from jax.experimental import pallas as pl
from jax.experimental.pallas import tpu as pltpu


def _round_up(x, m):
    return ((x + m - 1) // m) * m


def make_fk_kernel(parents, num_joints):
    """Build a Pallas kernel for a fixed kinematic tree.

    Assumes (as the reference code does implicitly) that joint 0 is the root
    (parents[0] == -1) and parents[i] < i for i > 0.
    """
    parents = tuple(int(p) for p in parents)
    J = int(num_joints)
    assert parents[0] == -1 and parents.count(-1) == 1, "joint 0 must be the only root"
    for j in range(1, J):
        assert 0 <= parents[j] < j, "parents must be topologically ordered"

    # joints with no children never need their global rotation
    has_child = [False] * J
    for j in range(1, J):
        has_child[parents[j]] = True

    def kernel(pose_ref, off_ref, tr_ref, out_ref, lrot_ref):
        # ---------------- batch Rodrigues, dense over (J, TB) ----------------
        vx = pose_ref[0]          # (J, TB)
        vy = pose_ref[1]
        vz = pose_ref[2]
        eps = jnp.float32(1e-8)
        ax = vx + eps
        ay = vy + eps
        az = vz + eps
        sq = ax * ax + ay * ay + az * az          # ||v + eps||^2
        inv_angle = lax.rsqrt(sq)                  # EUP
        angle = sq * inv_angle                     # = ||v + eps||
        rx = vx * inv_angle                        # rot_dir = v / ||v + eps||
        ry = vy * inv_angle
        rz = vz * inv_angle
        c = jnp.cos(angle)
        s = jnp.sin(angle)
        omc = 1.0 - c
        rr = rx * rx + ry * ry + rz * rz           # K@K = r r^T - (r.r) I
        # R = I + sin*K + (1-cos)*K@K, staged joint-plane-wise into VMEM
        lrot_ref[0] = 1.0 + omc * (rx * rx - rr)
        lrot_ref[1] = -s * rz + omc * rx * ry
        lrot_ref[2] = s * ry + omc * rx * rz
        lrot_ref[3] = s * rz + omc * rx * ry
        lrot_ref[4] = 1.0 + omc * (ry * ry - rr)
        lrot_ref[5] = -s * rx + omc * ry * rz
        lrot_ref[6] = -s * ry + omc * rx * rz
        lrot_ref[7] = s * rx + omc * ry * rz
        lrot_ref[8] = 1.0 + omc * (rz * rz - rr)

        # global translation, hoisted onto the root joint (positions compose
        # additively down the tree, so one add at the root reaches every joint)
        tr = tr_ref[...]                           # (3, TB)
        trx = tr[0:1, :]
        try_ = tr[1:2, :]
        trz = tr[2:3, :]

        # -------------- forward kinematics: static unroll over joints --------
        rot = [None] * J                           # per joint: 3x3 list of (1, TB)
        pos = [None] * J                           # per joint: 3-list of (1, TB)
        for j in range(J):
            # per-joint bone offset: scalars from SMEM, broadcast into vectors
            tjx = off_ref[3 * j + 0]
            tjy = off_ref[3 * j + 1]
            tjz = off_ref[3 * j + 2]
            p = parents[j]

            def load_local(jj=j):
                return [[lrot_ref[r * 3 + c, jj:jj + 1, :] for c in range(3)]
                        for r in range(3)]

            if p == -1:
                Gpos = [tjx + trx, tjy + try_, tjz + trz]
                Grot = load_local() if has_child[j] else None
            else:
                Prot, Ppos = rot[p], pos[p]
                Gpos = [Prot[r][0] * tjx + Prot[r][1] * tjy + Prot[r][2] * tjz
                        + Ppos[r] for r in range(3)]
                if has_child[j]:
                    Lj = load_local()
                    Grot = [[Prot[r][0] * Lj[0][c]
                             + Prot[r][1] * Lj[1][c]
                             + Prot[r][2] * Lj[2][c] for c in range(3)]
                            for r in range(3)]
                else:
                    Grot = None
            rot[j] = Grot
            pos[j] = Gpos
            # lane-dense (1, TB) row stores into the (3, J, TB) output block
            out_ref[0, j:j + 1, :] = Gpos[0]
            out_ref[1, j:j + 1, :] = Gpos[1]
            out_ref[2, j:j + 1, :] = Gpos[2]

    return kernel


def bvh_skeleton_forward(poses, offsets, trans, parents, *, batch_tile=None):
    """JAX/Pallas equivalent of BVHSkeleton.forward (axis-angle input)."""
    B, J, _ = poses.shape
    if batch_tile is None:
        TB = min(512, _round_up(max(B, 1), 128))   # lane-dense batch tile
    else:
        TB = int(batch_tile)
    B_pad = _round_up(max(B, 1), TB)

    # component/joint-planar, batch on the lane axis
    pose_planes = jnp.transpose(poses.astype(jnp.float32), (2, 1, 0))   # (3, J, B)
    pose_planes = jnp.pad(pose_planes, ((0, 0), (0, 0), (0, B_pad - B)))
    trans_planes = jnp.transpose(trans.astype(jnp.float32), (1, 0))     # (3, B)
    trans_planes = jnp.pad(trans_planes, ((0, 0), (0, B_pad - B)))
    off_flat = offsets.astype(jnp.float32).reshape(-1)                  # (3*J,)

    kernel = make_fk_kernel(parents, J)

    out = pl.pallas_call(
        kernel,
        out_shape=jax.ShapeDtypeStruct((3, J, B_pad), jnp.float32),
        grid=(B_pad // TB,),
        in_specs=[
            pl.BlockSpec((3, J, TB), lambda i: (0, 0, i)),          # poses
            pl.BlockSpec(memory_space=pltpu.MemorySpace.SMEM),      # offsets
            pl.BlockSpec((3, TB), lambda i: (0, i)),                # trans
        ],
        out_specs=pl.BlockSpec((3, J, TB), lambda i: (0, 0, i)),
        scratch_shapes=[pltpu.VMEM((9, J, TB), jnp.float32)],       # staged R
        compiler_params=pltpu.CompilerParams(
            dimension_semantics=("parallel",),
            vmem_limit_bytes=32 * 1024 * 1024,
        ),
    )(pose_planes, off_flat, trans_planes)

    # single transpose back to the PyTorch (batch, joints, 3) convention
    keypoints3d = jnp.transpose(out[:, :, :B], (2, 1, 0))
    return {"keypoints3d": keypoints3d}


# ---------------- pure-JAX reference (mirrors the torch code) ----------------
def _reference_forward(poses, offsets, trans, parents):
    B, J, _ = poses.shape
    rv = poses.reshape(-1, 3).astype(jnp.float32)
    angle = jnp.linalg.norm(rv + 1e-8, axis=1, keepdims=True)
    rdir = rv / angle
    cos = jnp.cos(angle)[:, :, None]
    sin = jnp.sin(angle)[:, :, None]
    rx, ry, rz = rdir[:, 0], rdir[:, 1], rdir[:, 2]
    zeros = jnp.zeros_like(rx)
    K = jnp.stack([zeros, -rz, ry, rz, zeros, -rx, -ry, rx, zeros],
                  axis=1).reshape(-1, 3, 3)
    ident = jnp.eye(3, dtype=jnp.float32)[None]
    R = ident + sin * K + (1.0 - cos) * jnp.matmul(K, K)
    R = R.reshape(B, J, 3, 3)
    T = jnp.zeros((B, J, 4, 4), jnp.float32)
    T = T.at[..., :3, :3].set(R).at[..., 3, 3].set(1.0)
    O = jnp.tile(jnp.eye(4, dtype=jnp.float32), (J, 1, 1))
    O = O.at[:, :3, 3].set(offsets.astype(jnp.float32))
    ST = jnp.matmul(O[None], T)                     # (B, J, 4, 4)
    results = [ST[:, 0]]
    for idx, p in enumerate(parents):
        if p != -1:
            results.append(results[p] @ ST[:, idx])
    res = jnp.stack(results, axis=1)                # (B, J, 4, 4)
    pos = res[:, :, :3, 3] + trans[:, None, :].astype(jnp.float32)
    return pos


if __name__ == "__main__":
    # Synthetic skeleton: 8 joints, root = joint 0, parents[i] < i.
    # TODO(synk): BVH file parsing (read_bvh/get_offsets/get_kintree) is
    # host-side setup with no kernel equivalent; a synthetic tree stands in.
    parents = [-1, 0, 1, 2, 0, 4, 0, 6]
    B, J = 2, len(parents)

    key = jax.random.PRNGKey(0)
    k_off, k_pose, k_tr = jax.random.split(key, 3)
    offsets = jax.random.normal(k_off, (J, 3), dtype=jnp.float32) * 0.5
    poses = jax.random.normal(k_pose, (B, J, 3), dtype=jnp.float32) * 0.3
    trans = jax.random.normal(k_tr, (B, 3), dtype=jnp.float32)

    out = bvh_skeleton_forward(poses, offsets, trans, parents)
    kpts = jax.block_until_ready(out["keypoints3d"])

    ref = np.asarray(_reference_forward(poses, offsets, trans, parents))
    assert kpts.shape == (B, J, 3), kpts.shape
    assert np.allclose(np.asarray(kpts), ref, atol=1e-4, rtol=1e-4), (
        np.max(np.abs(np.asarray(kpts) - ref)))

    print("KERNEL_OK")
</pallas_src>

<mosaic_0001>
module attributes {stable_mosaic.version = 11 : i64} {
  func.func @kernel(%arg0: i32, %arg1: memref<3x8x128xf32, #tpu.memory_space<vmem>>, %arg2: memref<24xf32, #tpu.memory_space<smem>>, %arg3: memref<3x128xf32, #tpu.memory_space<vmem>>, %arg4: memref<3x8x128xf32, #tpu.memory_space<vmem>>, %arg5: memref<9x8x128xf32, #tpu.memory_space<vmem>>) attributes {dimension_semantics = [#tpu.dimension_semantics<parallel>], iteration_bounds = array<i64: 1>, scalar_prefetch = 0 : i64, scratch_operands = 1 : i64, tpu.core_type = #tpu.core_type<tc>, window_params = [{transform_indices = @transform_0, window_bounds = array<i64: 3, 8, 128>}, {transform_indices = @transform_1, window_bounds = array<i64: 24>}, {transform_indices = @transform_2, window_bounds = array<i64: 3, 128>}, {transform_indices = @transform_3, window_bounds = array<i64: 3, 8, 128>}]} {
    %c0 = arith.constant 0 : index
    %c0_0 = arith.constant 0 : index
    %c0_1 = arith.constant 0 : index
    %0 = vector.load %arg1[%c0, %c0_0, %c0_1] : memref<3x8x128xf32, #tpu.memory_space<vmem>>, vector<1x8x128xf32>
    %1 = vector.shape_cast %0 : vector<1x8x128xf32> to vector<8x128xf32>
    %c1 = arith.constant 1 : index
    %c0_2 = arith.constant 0 : index
    %c0_3 = arith.constant 0 : index
    %2 = vector.load %arg1[%c1, %c0_2, %c0_3] : memref<3x8x128xf32, #tpu.memory_space<vmem>>, vector<1x8x128xf32>
    %3 = vector.shape_cast %2 : vector<1x8x128xf32> to vector<8x128xf32>
    %c2 = arith.constant 2 : index
    %c0_4 = arith.constant 0 : index
    %c0_5 = arith.constant 0 : index
    %4 = vector.load %arg1[%c2, %c0_4, %c0_5] : memref<3x8x128xf32, #tpu.memory_space<vmem>>, vector<1x8x128xf32>
    %5 = vector.shape_cast %4 : vector<1x8x128xf32> to vector<8x128xf32>
    %cst = arith.constant 9.99999993E-9 : f32
    %6 = vector.broadcast %cst : f32 to vector<8x128xf32>
    %7 = arith.addf %1, %6 : vector<8x128xf32>
    %cst_6 = arith.constant 9.99999993E-9 : f32
    %8 = vector.broadcast %cst_6 : f32 to vector<8x128xf32>
    %9 = arith.addf %3, %8 : vector<8x128xf32>
    %cst_7 = arith.constant 9.99999993E-9 : f32
    %10 = vector.broadcast %cst_7 : f32 to vector<8x128xf32>
    %11 = arith.addf %5, %10 : vector<8x128xf32>
    %12 = arith.mulf %7, %7 : vector<8x128xf32>
    %13 = arith.mulf %9, %9 : vector<8x128xf32>
    %14 = arith.addf %12, %13 : vector<8x128xf32>
    %15 = arith.mulf %11, %11 : vector<8x128xf32>
    %16 = arith.addf %14, %15 : vector<8x128xf32>
    %17 = math.rsqrt %16 : vector<8x128xf32>
    %18 = arith.mulf %16, %17 : vector<8x128xf32>
    %19 = arith.mulf %1, %17 : vector<8x128xf32>
    %20 = arith.mulf %3, %17 : vector<8x128xf32>
    %21 = arith.mulf %5, %17 : vector<8x128xf32>
    %22 = math.cos %18 : vector<8x128xf32>
    %23 = math.sin %18 : vector<8x128xf32>
    %cst_8 = arith.constant 1.000000e+00 : f32
    %24 = vector.broadcast %cst_8 : f32 to vector<8x128xf32>
    %25 = arith.subf %24, %22 : vector<8x128xf32>
    %26 = arith.mulf %19, %19 : vector<8x128xf32>
    %27 = arith.mulf %20, %20 : vector<8x128xf32>
    %28 = arith.addf %26, %27 : vector<8x128xf32>
    %29 = arith.mulf %21, %21 : vector<8x128xf32>
    %30 = arith.addf %28, %29 : vector<8x128xf32>
    %31 = arith.mulf %19, %19 : vector<8x128xf32>
    %32 = arith.subf %31, %30 : vector<8x128xf32>
    %33 = arith.mulf %25, %32 : vector<8x128xf32>
    %cst_9 = arith.constant 1.000000e+00 : f32
    %34 = vector.broadcast %cst_9 : f32 to vector<8x128xf32>
    %35 = arith.addf %34, %33 : vector<8x128xf32>
    %c0_10 = arith.constant 0 : index
    %c0_11 = arith.constant 0 : index
    %c0_12 = arith.constant 0 : index
    %36 = vector.load %arg5[%c0_10, %c0_11, %c0_12] : memref<9x8x128xf32, #tpu.memory_space<vmem>>, vector<1x8x128xf32>
    %37 = vector.shape_cast %36 : vector<1x8x128xf32> to vector<8x128xf32>
    %38 = vector.shape_cast %35 : vector<8x128xf32> to vector<1x8x128xf32>
    tpu.vector_store %arg5[%c0_10, %c0_11, %c0_12], %38 {strides = array<i32>} : memref<9x8x128xf32, #tpu.memory_space<vmem>>, vector<1x8x128xf32>,
    %cst_13 = arith.constant 0.000000e+00 : f32
    %39 = vector.broadcast %cst_13 : f32 to vector<8x128xf32>
    %40 = arith.subf %39, %23 : vector<8x128xf32>
    %41 = arith.mulf %40, %21 : vector<8x128xf32>
    %42 = arith.mulf %25, %19 : vector<8x128xf32>
    %43 = arith.mulf %42, %20 : vector<8x128xf32>
    %44 = arith.addf %41, %43 : vector<8x128xf32>
    %c1_14 = arith.constant 1 : index
    %c0_15 = arith.constant 0 : index
    %c0_16 = arith.constant 0 : index
    %45 = vector.load %arg5[%c1_14, %c0_15, %c0_16] : memref<9x8x128xf32, #tpu.memory_space<vmem>>, vector<1x8x128xf32>
    %46 = vector.shape_cast %45 : vector<1x8x128xf32> to vector<8x128xf32>
    %47 = vector.shape_cast %44 : vector<8x128xf32> to vector<1x8x128xf32>
    tpu.vector_store %arg5[%c1_14, %c0_15, %c0_16], %47 {strides = array<i32>} : memref<9x8x128xf32, #tpu.memory_space<vmem>>, vector<1x8x128xf32>,
    %48 = arith.mulf %23, %20 : vector<8x128xf32>
    %49 = arith.mulf %25, %19 : vector<8x128xf32>
    %50 = arith.mulf %49, %21 : vector<8x128xf32>
    %51 = arith.addf %48, %50 : vector<8x128xf32>
    %c2_17 = arith.constant 2 : index
    %c0_18 = arith.constant 0 : index
    %c0_19 = arith.constant 0 : index
    %52 = vector.load %arg5[%c2_17, %c0_18, %c0_19] : memref<9x8x128xf32, #tpu.memory_space<vmem>>, vector<1x8x128xf32>
    %53 = vector.shape_cast %52 : vector<1x8x128xf32> to vector<8x128xf32>
    %54 = vector.shape_cast %51 : vector<8x128xf32> to vector<1x8x128xf32>
    tpu.vector_store %arg5[%c2_17, %c0_18, %c0_19], %54 {strides = array<i32>} : memref<9x8x128xf32, #tpu.memory_space<vmem>>, vector<1x8x128xf32>,
    %55 = arith.mulf %23, %21 : vector<8x128xf32>
    %56 = arith.mulf %25, %19 : vector<8x128xf32>
    %57 = arith.mulf %56, %20 : vector<8x128xf32>
    %58 = arith.addf %55, %57 : vector<8x128xf32>
    %c3 = arith.constant 3 : index
    %c0_20 = arith.constant 0 : index
    %c0_21 = arith.constant 0 : index
    %59 = vector.load %arg5[%c3, %c0_20, %c0_21] : memref<9x8x128xf32, #tpu.memory_space<vmem>>, vector<1x8x128xf32>
    %60 = vector.shape_cast %59 : vector<1x8x128xf32> to vector<8x128xf32>
    %61 = vector.shape_cast %58 : vector<8x128xf32> to vector<1x8x128xf32>
    tpu.vector_store %arg5[%c3, %c0_20, %c0_21], %61 {strides = array<i32>} : memref<9x8x128xf32, #tpu.memory_space<vmem>>, vector<1x8x128xf32>,
    %62 = arith.mulf %20, %20 : vector<8x128xf32>
    %63 = arith.subf %62, %30 : vector<8x128xf32>
    %64 = arith.mulf %25, %63 : vector<8x128xf32>
    %cst_22 = arith.constant 1.000000e+00 : f32
    %65 = vector.broadcast %cst_22 : f32 to vector<8x128xf32>
    %66 = arith.addf %65, %64 : vector<8x128xf32>
    %c4 = arith.constant 4 : index
    %c0_23 = arith.constant 0 : index
    %c0_24 = arith.constant 0 : index
    %67 = vector.load %arg5[%c4, %c0_23, %c0_24] : memref<9x8x128xf32, #tpu.memory_space<vmem>>, vector<1x8x128xf32>
    %68 = vector.shape_cast %67 : vector<1x8x128xf32> to vector<8x128xf32>
    %69 = vector.shape_cast %66 : vector<8x128xf32> to vector<1x8x128xf32>
    tpu.vector_store %arg5[%c4, %c0_23, %c0_24], %69 {strides = array<i32>} : memref<9x8x128xf32, #tpu.memory_space<vmem>>, vector<1x8x128xf32>,
    %cst_25 = arith.constant 0.000000e+00 : f32
    %70 = vector.broadcast %cst_25 : f32 to vector<8x128xf32>
    %71 = arith.subf %70, %23 : vector<8x128xf32>
    %72 = arith.mulf %71, %19 : vector<8x128xf32>
    %73 = arith.mulf %25, %20 : vector<8x128xf32>
    %74 = arith.mulf %73, %21 : vector<8x128xf32>
    %75 = arith.addf %72, %74 : vector<8x128xf32>
    %c5 = arith.constant 5 : index
    %c0_26 = arith.constant 0 : index
    %c0_27 = arith.constant 0 : index
    %76 = vector.load %arg5[%c5, %c0_26, %c0_27] : memref<9x8x128xf32, #tpu.memory_space<vmem>>, vector<1x8x128xf32>
    %77 = vector.shape_cast %76 : vector<1x8x128xf32> to vector<8x128xf32>
    %78 = vector.shape_cast %75 : vector<8x128xf32> to vector<1x8x128xf32>
    tpu.vector_store %arg5[%c5, %c0_26, %c0_27], %78 {strides = array<i32>} : memref<9x8x128xf32, #tpu.memory_space<vmem>>, vector<1x8x128xf32>,
    %cst_28 = arith.constant 0.000000e+00 : f32
    %79 = vector.broadcast %cst_28 : f32 to vector<8x128xf32>
    %80 = arith.subf %79, %23 : vector<8x128xf32>
    %81 = arith.mulf %80, %20 : vector<8x128xf32>
    %82 = arith.mulf %25, %19 : vector<8x128xf32>
    %83 = arith.mulf %82, %21 : vector<8x128xf32>
    %84 = arith.addf %81, %83 : vector<8x128xf32>
    %c6 = arith.constant 6 : index
    %c0_29 = arith.constant 0 : index
    %c0_30 = arith.constant 0 : index
    %85 = vector.load %arg5[%c6, %c0_29, %c0_30] : memref<9x8x128xf32, #tpu.memory_space<vmem>>, vector<1x8x128xf32>
    %86 = vector.shape_cast %85 : vector<1x8x128xf32> to vector<8x128xf32>
    %87 = vector.shape_cast %84 : vector<8x128xf32> to vector<1x8x128xf32>
    tpu.vector_store %arg5[%c6, %c0_29, %c0_30], %87 {strides = array<i32>} : memref<9x8x128xf32, #tpu.memory_space<vmem>>, vector<1x8x128xf32>,
    %88 = arith.mulf %23, %19 : vector<8x128xf32>
    %89 = arith.mulf %25, %20 : vector<8x128xf32>
    %90 = arith.mulf %89, %21 : vector<8x128xf32>
    %91 = arith.addf %88, %90 : vector<8x128xf32>
    %c7 = arith.constant 7 : index
    %c0_31 = arith.constant 0 : index
    %c0_32 = arith.constant 0 : index
    %92 = vector.load %arg5[%c7, %c0_31, %c0_32] : memref<9x8x128xf32, #tpu.memory_space<vmem>>, vector<1x8x128xf32>
    %93 = vector.shape_cast %92 : vector<1x8x128xf32> to vector<8x128xf32>
    %94 = vector.shape_cast %91 : vector<8x128xf32> to vector<1x8x128xf32>
    tpu.vector_store %arg5[%c7, %c0_31, %c0_32], %94 {strides = array<i32>} : memref<9x8x128xf32, #tpu.memory_space<vmem>>, vector<1x8x128xf32>,
    %95 = arith.mulf %21, %21 : vector<8x128xf32>
    %96 = arith.subf %95, %30 : vector<8x128xf32>
    %97 = arith.mulf %25, %96 : vector<8x128xf32>
    %cst_33 = arith.constant 1.000000e+00 : f32
    %98 = vector.broadcast %cst_33 : f32 to vector<8x128xf32>
    %99 = arith.addf %98, %97 : vector<8x128xf32>
    %c8 = arith.constant 8 : index
    %c0_34 = arith.constant 0 : index
    %c0_35 = arith.constant 0 : index
    %100 = vector.load %arg5[%c8, %c0_34, %c0_35] : memref<9x8x128xf32, #tpu.memory_space<vmem>>, vector<1x8x128xf32>
    %101 = vector.shape_cast %100 : vector<1x8x128xf32> to vector<8x128xf32>
    %102 = vector.shape_cast %99 : vector<8x128xf32> to vector<1x8x128xf32>
    tpu.vector_store %arg5[%c8, %c0_34, %c0_35], %102 {strides = array<i32>} : memref<9x8x128xf32, #tpu.memory_space<vmem>>, vector<1x8x128xf32>,
    %c0_36 = arith.constant 0 : index
    %c0_37 = arith.constant 0 : index
    %103 = vector.load %arg3[%c0_36, %c0_37] : memref<3x128xf32, #tpu.memory_space<vmem>>, vector<3x128xf32>
    %104 = vector.extract_strided_slice %103 {offsets = [0, 0], sizes = [1, 128], strides = [1, 1]} : vector<3x128xf32> to vector<1x128xf32>
    %105 = vector.extract_strided_slice %103 {offsets = [1, 0], sizes = [1, 128], strides = [1, 1]} : vector<3x128xf32> to vector<1x128xf32>
    %106 = vector.extract_strided_slice %103 {offsets = [2, 0], sizes = [1, 128], strides = [1, 1]} : vector<3x128xf32> to vector<1x128xf32>
    %c0_38 = arith.constant 0 : index
    %107 = memref.load %arg2[%c0_38] : memref<24xf32, #tpu.memory_space<smem>>
    %c1_39 = arith.constant 1 : index
    %108 = memref.load %arg2[%c1_39] : memref<24xf32, #tpu.memory_space<smem>>
    %c2_40 = arith.constant 2 : index
    %109 = memref.load %arg2[%c2_40] : memref<24xf32, #tpu.memory_space<smem>>
    %110 = vector.broadcast %107 : f32 to vector<1x128xf32>
    %111 = arith.addf %110, %104 : vector<1x128xf32>
    %112 = vector.broadcast %108 : f32 to vector<1x128xf32>
    %113 = arith.addf %112, %105 : vector<1x128xf32>
    %114 = vector.broadcast %109 : f32 to vector<1x128xf32>
    %115 = arith.addf %114, %106 : vector<1x128xf32>
    %c0_41 = arith.constant 0 : index
    %c0_42 = arith.constant 0 : index
    %c0_43 = arith.constant 0 : index
    %116 = vector.load %arg5[%c0_41, %c0_42, %c0_43] : memref<9x8x128xf32, #tpu.memory_space<vmem>>, vector<1x1x128xf32>
    %117 = vector.shape_cast %116 : vector<1x1x128xf32> to vector<1x128xf32>
    %c1_44 = arith.constant 1 : index
    %c0_45 = arith.constant 0 : index
    %c0_46 = arith.constant 0 : index
    %118 = vector.load %arg5[%c1_44, %c0_45, %c0_46] : memref<9x8x128xf32, #tpu.memory_space<vmem>>, vector<1x1x128xf32>
    %119 = vector.shape_cast %118 : vector<1x1x128xf32> to vector<1x128xf32>
    %c2_47 = arith.constant 2 : index
    %c0_48 = arith.constant 0 : index
    %c0_49 = arith.constant 0 : index
    %120 = vector.load %arg5[%c2_47, %c0_48, %c0_49] : memref<9x8x128xf32, #tpu.memory_space<vmem>>, vector<1x1x128xf32>
    %121 = vector.shape_cast %120 : vector<1x1x128xf32> to vector<1x128xf32>
    %c3_50 = arith.constant 3 : index
    %c0_51 = arith.constant 0 : index
    %c0_52 = arith.constant 0 : index
    %122 = vector.load %arg5[%c3_50, %c0_51, %c0_52] : memref<9x8x128xf32, #tpu.memory_space<vmem>>, vector<1x1x128xf32>
    %123 = vector.shape_cast %122 : vector<1x1x128xf32> to vector<1x128xf32>
    %c4_53 = arith.constant 4 : index
    %c0_54 = arith.constant 0 : index
    %c0_55 = arith.constant 0 : index
    %124 = vector.load %arg5[%c4_53, %c0_54, %c0_55] : memref<9x8x128xf32, #tpu.memory_space<vmem>>, vector<1x1x128xf32>
    %125 = vector.shape_cast %124 : vector<1x1x128xf32> to vector<1x128xf32>
    %c5_56 = arith.constant 5 : index
    %c0_57 = arith.constant 0 : index
    %c0_58 = arith.constant 0 : index
    %126 = vector.load %arg5[%c5_56, %c0_57, %c0_58] : memref<9x8x128xf32, #tpu.memory_space<vmem>>, vector<1x1x128xf32>
    %127 = vector.shape_cast %126 : vector<1x1x128xf32> to vector<1x128xf32>
    %c6_59 = arith.constant 6 : index
    %c0_60 = arith.constant 0 : index
    %c0_61 = arith.constant 0 : index
    %128 = vector.load %arg5[%c6_59, %c0_60, %c0_61] : memref<9x8x128xf32, #tpu.memory_space<vmem>>, vector<1x1x128xf32>
    %129 = vector.shape_cast %128 : vector<1x1x128xf32> to vector<1x128xf32>
    %c7_62 = arith.constant 7 : index
    %c0_63 = arith.constant 0 : index
    %c0_64 = arith.constant 0 : index
    %130 = vector.load %arg5[%c7_62, %c0_63, %c0_64] : memref<9x8x128xf32, #tpu.memory_space<vmem>>, vector<1x1x128xf32>
    %131 = vector.shape_cast %130 : vector<1x1x128xf32> to vector<1x128xf32>
    %c8_65 = arith.constant 8 : index
    %c0_66 = arith.constant 0 : index
    %c0_67 = arith.constant 0 : index
    %132 = vector.load %arg5[%c8_65, %c0_66, %c0_67] : memref<9x8x128xf32, #tpu.memory_space<vmem>>, vector<1x1x128xf32>
    %133 = vector.shape_cast %132 : vector<1x1x128xf32> to vector<1x128xf32>
    %c0_68 = arith.constant 0 : index
    %c0_69 = arith.constant 0 : index
    %c0_70 = arith.constant 0 : index
    %134 = vector.load %arg4[%c0_68, %c0_69, %c0_70] : memref<3x8x128xf32, #tpu.memory_space<vmem>>, vector<1x1x128xf32>
    %135 = vector.shape_cast %134 : vector<1x1x128xf32> to vector<1x128xf32>
    %136 = vector.shape_cast %111 : vector<1x128xf32> to vector<1x1x128xf32>
    tpu.vector_store %arg4[%c0_68, %c0_69, %c0_70], %136 {strides = array<i32>} : memref<3x8x128xf32, #tpu.memory_space<vmem>>, vector<1x1x128xf32>,
    %c1_71 = arith.constant 1 : index
    %c0_72 = arith.constant 0 : index
    %c0_73 = arith.constant 0 : index
    %137 = vector.load %arg4[%c1_71, %c0_72, %c0_73] : memref<3x8x128xf32, #tpu.memory_space<vmem>>, vector<1x1x128xf32>
    %138 = vector.shape_cast %137 : vector<1x1x128xf32> to vector<1x128xf32>
    %139 = vector.shape_cast %113 : vector<1x128xf32> to vector<1x1x128xf32>
    tpu.vector_store %arg4[%c1_71, %c0_72, %c0_73], %139 {strides = array<i32>} : memref<3x8x128xf32, #tpu.memory_space<vmem>>, vector<1x1x128xf32>,
    %c2_74 = arith.constant 2 : index
    %c0_75 = arith.constant 0 : index
    %c0_76 = arith.constant 0 : index
    %140 = vector.load %arg4[%c2_74, %c0_75, %c0_76] : memref<3x8x128xf32, #tpu.memory_space<vmem>>, vector<1x1x128xf32>
    %141 = vector.shape_cast %140 : vector<1x1x128xf32> to vector<1x128xf32>
    %142 = vector.shape_cast %115 : vector<1x128xf32> to vector<1x1x128xf32>
    tpu.vector_store %arg4[%c2_74, %c0_75, %c0_76], %142 {strides = array<i32>} : memref<3x8x128xf32, #tpu.memory_space<vmem>>, vector<1x1x128xf32>,
    %c3_77 = arith.constant 3 : index
    %143 = memref.load %arg2[%c3_77] : memref<24xf32, #tpu.memory_space<smem>>
    %c4_78 = arith.constant 4 : index
    %144 = memref.load %arg2[%c4_78] : memref<24xf32, #tpu.memory_space<smem>>
    %c5_79 = arith.constant 5 : index
    %145 = memref.load %arg2[%c5_79] : memref<24xf32, #tpu.memory_space<smem>>
    %146 = vector.broadcast %143 : f32 to vector<1x128xf32>
    %147 = arith.mulf %117, %146 : vector<1x128xf32>
    %148 = vector.broadcast %144 : f32 to vector<1x128xf32>
    %149 = arith.mulf %119, %148 : vector<1x128xf32>
    %150 = arith.addf %147, %149 : vector<1x128xf32>
    %151 = vector.broadcast %145 : f32 to vector<1x128xf32>
    %152 = arith.mulf %121, %151 : vector<1x128xf32>
    %153 = arith.addf %150, %152 : vector<1x128xf32>
    %154 = arith.addf %153, %111 : vector<1x128xf32>
    %155 = vector.broadcast %143 : f32 to vector<1x128xf32>
    %156 = arith.mulf %123, %155 : vector<1x128xf32>
    %157 = vector.broadcast %144 : f32 to vector<1x128xf32>
    %158 = arith.mulf %125, %157 : vector<1x128xf32>
    %159 = arith.addf %156, %158 : vector<1x128xf32>
    %160 = vector.broadcast %145 : f32 to vector<1x128xf32>
    %161 = arith.mulf %127, %160 : vector<1x128xf32>
    %162 = arith.addf %159, %161 : vector<1x128xf32>
    %163 = arith.addf %162, %113 : vector<1x128xf32>
    %164 = vector.broadcast %143 : f32 to vector<1x128xf32>
    %165 = arith.mulf %129, %164 : vector<1x128xf32>
    %166 = vector.broadcast %144 : f32 to vector<1x128xf32>
    %167 = arith.mulf %131, %166 : vector<1x128xf32>
    %168 = arith.addf %165, %167 : vector<1x128xf32>
    %169 = vector.broadcast %145 : f32 to vector<1x128xf32>
    %170 = arith.mulf %133, %169 : vector<1x128xf32>
    %171 = arith.addf %168, %170 : vector<1x128xf32>
    %172 = arith.addf %171, %115 : vector<1x128xf32>
    %c0_80 = arith.constant 0 : index
    %c1_81 = arith.constant 1 : index
    %c0_82 = arith.constant 0 : index
    %173 = vector.load %arg5[%c0_80, %c1_81, %c0_82] : memref<9x8x128xf32, #tpu.memory_space<vmem>>, vector<1x1x128xf32>
    %174 = vector.shape_cast %173 : vector<1x1x128xf32> to vector<1x128xf32>
    %c1_83 = arith.constant 1 : index
    %c1_84 = arith.constant 1 : index
    %c0_85 = arith.constant 0 : index
    %175 = vector.load %arg5[%c1_83, %c1_84, %c0_85] : memref<9x8x128xf32, #tpu.memory_space<vmem>>, vector<1x1x128xf32>
    %176 = vector.shape_cast %175 : vector<1x1x128xf32> to vector<1x128xf32>
    %c2_86 = arith.constant 2 : index
    %c1_87 = arith.constant 1 : index
    %c0_88 = arith.constant 0 : index
    %177 = vector.load %arg5[%c2_86, %c1_87, %c0_88] : memref<9x8x128xf32, #tpu.memory_space<vmem>>, vector<1x1x128xf32>
    %178 = vector.shape_cast %177 : vector<1x1x128xf32> to vector<1x128xf32>
    %c3_89 = arith.constant 3 : index
    %c1_90 = arith.constant 1 : index
    %c0_91 = arith.constant 0 : index
    %179 = vector.load %arg5[%c3_89, %c1_90, %c0_91] : memref<9x8x128xf32, #tpu.memory_space<vmem>>, vector<1x1x128xf32>
    %180 = vector.shape_cast %179 : vector<1x1x128xf32> to vector<1x128xf32>
    %c4_92 = arith.constant 4 : index
    %c1_93 = arith.constant 1 : index
    %c0_94 = arith.constant 0 : index
    %181 = vector.load %arg5[%c4_92, %c1_93, %c0_94] : memref<9x8x128xf32, #tpu.memory_space<vmem>>, vector<1x1x128xf32>
    %182 = vector.shape_cast %181 : vector<1x1x128xf32> to vector<1x128xf32>
    %c5_95 = arith.constant 5 : index
    %c1_96 = arith.constant 1 : index
    %c0_97 = arith.constant 0 : index
    %183 = vector.load %arg5[%c5_95, %c1_96, %c0_97] : memref<9x8x128xf32, #tpu.memory_space<vmem>>, vector<1x1x128xf32>
    %184 = vector.shape_cast %183 : vector<1x1x128xf32> to vector<1x128xf32>
    %c6_98 = arith.constant 6 : index
    %c1_99 = arith.constant 1 : index
    %c0_100 = arith.constant 0 : index
    %185 = vector.load %arg5[%c6_98, %c1_99, %c0_100] : memref<9x8x128xf32, #tpu.memory_space<vmem>>, vector<1x1x128xf32>
    %186 = vector.shape_cast %185 : vector<1x1x128xf32> to vector<1x128xf32>
    %c7_101 = arith.constant 7 : index
    %c1_102 = arith.constant 1 : index
    %c0_103 = arith.constant 0 : index
    %187 = vector.load %arg5[%c7_101, %c1_102, %c0_103] : memref<9x8x128xf32, #tpu.memory_space<vmem>>, vector<1x1x128xf32>
    %188 = vector.shape_cast %187 : vector<1x1x128xf32> to vector<1x128xf32>
    %c8_104 = arith.constant 8 : index
    %c1_105 = arith.constant 1 : index
    %c0_106 = arith.constant 0 : index
    %189 = vector.load %arg5[%c8_104, %c1_105, %c0_106] : memref<9x8x128xf32, #tpu.memory_space<vmem>>, vector<1x1x128xf32>
    %190 = vector.shape_cast %189 : vector<1x1x128xf32> to vector<1x128xf32>
    %191 = arith.mulf %117, %174 : vector<1x128xf32>
    %192 = arith.mulf %119, %180 : vector<1x128xf32>
    %193 = arith.addf %191, %192 : vector<1x128xf32>
    %194 = arith.mulf %121, %186 : vector<1x128xf32>
    %195 = arith.addf %193, %194 : vector<1x128xf32>
    %196 = arith.mulf %117, %176 : vector<1x128xf32>
    %197 = arith.mulf %119, %182 : vector<1x128xf32>
    %198 = arith.addf %196, %197 : vector<1x128xf32>
    %199 = arith.mulf %121, %188 : vector<1x128xf32>
    %200 = arith.addf %198, %199 : vector<1x128xf32>
    %201 = arith.mulf %117, %178 : vector<1x128xf32>
    %202 = arith.mulf %119, %184 : vector<1x128xf32>
    %203 = arith.addf %201, %202 : vector<1x128xf32>
    %204 = arith.mulf %121, %190 : vector<1x128xf32>
    %205 = arith.addf %203, %204 : vector<1x128xf32>
    %206 = arith.mulf %123, %174 : vector<1x128xf32>
    %207 = arith.mulf %125, %180 : vector<1x128xf32>
    %208 = arith.addf %206, %207 : vector<1x128xf32>
    %209 = arith.mulf %127, %186 : vector<1x128xf32>
    %210 = arith.addf %208, %209 : vector<1x128xf32>
    %211 = arith.mulf %123, %176 : vector<1x128xf32>
    %212 = arith.mulf %125, %182 : vector<1x128xf32>
    %213 = arith.addf %211, %212 : vector<1x128xf32>
    %214 = arith.mulf %127, %188 : vector<1x128xf32>
    %215 = arith.addf %213, %214 : vector<1x128xf32>
    %216 = arith.mulf %123, %178 : vector<1x128xf32>
    %217 = arith.mulf %125, %184 : vector<1x128xf32>
    %218 = arith.addf %216, %217 : vector<1x128xf32>
    %219 = arith.mulf %127, %190 : vector<1x128xf32>
    %220 = arith.addf %218, %219 : vector<1x128xf32>
    %221 = arith.mulf %129, %174 : vector<1x128xf32>
    %222 = arith.mulf %131, %180 : vector<1x128xf32>
    %223 = arith.addf %221, %222 : vector<1x128xf32>
    %224 = arith.mulf %133, %186 : vector<1x128xf32>
    %225 = arith.addf %223, %224 : vector<1x128xf32>
    %226 = arith.mulf %129, %176 : vector<1x128xf32>
    %227 = arith.mulf %131, %182 : vector<1x128xf32>
    %228 = arith.addf %226, %227 : vector<1x128xf32>
    %229 = arith.mulf %133, %188 : vector<1x128xf32>
    %230 = arith.addf %228, %229 : vector<1x128xf32>
    %231 = arith.mulf %129, %178 : vector<1x128xf32>
    %232 = arith.mulf %131, %184 : vector<1x128xf32>
    %233 = arith.addf %231, %232 : vector<1x128xf32>
    %234 = arith.mulf %133, %190 : vector<1x128xf32>
    %235 = arith.addf %233, %234 : vector<1x128xf32>
    %c0_107 = arith.constant 0 : index
    %c1_108 = arith.constant 1 : index
    %c0_109 = arith.constant 0 : index
    %236 = vector.load %arg4[%c0_107, %c1_108, %c0_109] : memref<3x8x128xf32, #tpu.memory_space<vmem>>, vector<1x1x128xf32>
    %237 = vector.shape_cast %236 : vector<1x1x128xf32> to vector<1x128xf32>
    %238 = vector.shape_cast %154 : vector<1x128xf32> to vector<1x1x128xf32>
    tpu.vector_store %arg4[%c0_107, %c1_108, %c0_109], %238 {strides = array<i32>} : memref<3x8x128xf32, #tpu.memory_space<vmem>>, vector<1x1x128xf32>,
    %c1_110 = arith.constant 1 : index
    %c1_111 = arith.constant 1 : index
    %c0_112 = arith.constant 0 : index
    %239 = vector.load %arg4[%c1_110, %c1_111, %c0_112] : memref<3x8x128xf32, #tpu.memory_space<vmem>>, vector<1x1x128xf32>
    %240 = vector.shape_cast %239 : vector<1x1x128xf32> to vector<1x128xf32>
    %241 = vector.shape_cast %163 : vector<1x128xf32> to vector<1x1x128xf32>
    tpu.vector_store %arg4[%c1_110, %c1_111, %c0_112], %241 {strides = array<i32>} : memref<3x8x128xf32, #tpu.memory_space<vmem>>, vector<1x1x128xf32>,
    %c2_113 = arith.constant 2 : index
    %c1_114 = arith.constant 1 : index
    %c0_115 = arith.constant 0 : index
    %242 = vector.load %arg4[%c2_113, %c1_114, %c0_115] : memref<3x8x128xf32, #tpu.memory_space<vmem>>, vector<1x1x128xf32>
    %243 = vector.shape_cast %242 : vector<1x1x128xf32> to vector<1x128xf32>
    %244 = vector.shape_cast %172 : vector<1x128xf32> to vector<1x1x128xf32>
    tpu.vector_store %arg4[%c2_113, %c1_114, %c0_115], %244 {strides = array<i32>} : memref<3x8x128xf32, #tpu.memory_space<vmem>>, vector<1x1x128xf32>,
    %c6_116 = arith.constant 6 : index
    %245 = memref.load %arg2[%c6_116] : memref<24xf32, #tpu.memory_space<smem>>
    %c7_117 = arith.constant 7 : index
    %246 = memref.load %arg2[%c7_117] : memref<24xf32, #tpu.memory_space<smem>>
    %c8_118 = arith.constant 8 : index
    %247 = memref.load %arg2[%c8_118] : memref<24xf32, #tpu.memory_space<smem>>
    %248 = vector.broadcast %245 : f32 to vector<1x128xf32>
    %249 = arith.mulf %195, %248 : vector<1x128xf32>
    %250 = vector.broadcast %246 : f32 to vector<1x128xf32>
    %251 = arith.mulf %200, %250 : vector<1x128xf32>
    %252 = arith.addf %249, %251 : vector<1x128xf32>
    %253 = vector.broadcast %247 : f32 to vector<1x128xf32>
    %254 = arith.mulf %205, %253 : vector<1x128xf32>
    %255 = arith.addf %252, %254 : vector<1x128xf32>
    %256 = arith.addf %255, %154 : vector<1x128xf32>
    %257 = vector.broadcast %245 : f32 to vector<1x128xf32>
    %258 = arith.mulf %210, %257 : vector<1x128xf32>
    %259 = vector.broadcast %246 : f32 to vector<1x128xf32>
    %260 = arith.mulf %215, %259 : vector<1x128xf32>
    %261 = arith.addf %258, %260 : vector<1x128xf32>
    %262 = vector.broadcast %247 : f32 to vector<1x128xf32>
    %263 = arith.mulf %220, %262 : vector<1x128xf32>
    %264 = arith.addf %261, %263 : vector<1x128xf32>
    %265 = arith.addf %264, %163 : vector<1x128xf32>
    %266 = vector.broadcast %245 : f32 to vector<1x128xf32>
    %267 = arith.mulf %225, %266 : vector<1x128xf32>
    %268 = vector.broadcast %246 : f32 to vector<1x128xf32>
    %269 = arith.mulf %230, %268 : vector<1x128xf32>
    %270 = arith.addf %267, %269 : vector<1x128xf32>
    %271 = vector.broadcast %247 : f32 to vector<1x128xf32>
    %272 = arith.mulf %235, %271 : vector<1x128xf32>
    %273 = arith.addf %270, %272 : vector<1x128xf32>
    %274 = arith.addf %273, %172 : vector<1x128xf32>
    %c0_119 = arith.constant 0 : index
    %c2_120 = arith.constant 2 : index
    %c0_121 = arith.constant 0 : index
    %275 = vector.load %arg5[%c0_119, %c2_120, %c0_121] : memref<9x8x128xf32, #tpu.memory_space<vmem>>, vector<1x1x128xf32>
    %276 = vector.shape_cast %275 : vector<1x1x128xf32> to vector<1x128xf32>
    %c1_122 = arith.constant 1 : index
    %c2_123 = arith.constant 2 : index
    %c0_124 = arith.constant 0 : index
    %277 = vector.load %arg5[%c1_122, %c2_123, %c0_124] : memref<9x8x128xf32, #tpu.memory_space<vmem>>, vector<1x1x128xf32>
    %278 = vector.shape_cast %277 : vector<1x1x128xf32> to vector<1x128xf32>
    %c2_125 = arith.constant 2 : index
    %c2_126 = arith.constant 2 : index
    %c0_127 = arith.constant 0 : index
    %279 = vector.load %arg5[%c2_125, %c2_126, %c0_127] : memref<9x8x128xf32, #tpu.memory_space<vmem>>, vector<1x1x128xf32>
    %280 = vector.shape_cast %279 : vector<1x1x128xf32> to vector<1x128xf32>
    %c3_128 = arith.constant 3 : index
    %c2_129 = arith.constant 2 : index
    %c0_130 = arith.constant 0 : index
    %281 = vector.load %arg5[%c3_128, %c2_129, %c0_130] : memref<9x8x128xf32, #tpu.memory_space<vmem>>, vector<1x1x128xf32>
    %282 = vector.shape_cast %281 : vector<1x1x128xf32> to vector<1x128xf32>
    %c4_131 = arith.constant 4 : index
    %c2_132 = arith.constant 2 : index
    %c0_133 = arith.constant 0 : index
    %283 = vector.load %arg5[%c4_131, %c2_132, %c0_133] : memref<9x8x128xf32, #tpu.memory_space<vmem>>, vector<1x1x128xf32>
    %284 = vector.shape_cast %283 : vector<1x1x128xf32> to vector<1x128xf32>
    %c5_134 = arith.constant 5 : index
    %c2_135 = arith.constant 2 : index
    %c0_136 = arith.constant 0 : index
    %285 = vector.load %arg5[%c5_134, %c2_135, %c0_136] : memref<9x8x128xf32, #tpu.memory_space<vmem>>, vector<1x1x128xf32>
    %286 = vector.shape_cast %285 : vector<1x1x128xf32> to vector<1x128xf32>
    %c6_137 = arith.constant 6 : index
    %c2_138 = arith.constant 2 : index
    %c0_139 = arith.constant 0 : index
    %287 = vector.load %arg5[%c6_137, %c2_138, %c0_139] : memref<9x8x128xf32, #tpu.memory_space<vmem>>, vector<1x1x128xf32>
    %288 = vector.shape_cast %287 : vector<1x1x128xf32> to vector<1x128xf32>
    %c7_140 = arith.constant 7 : index
    %c2_141 = arith.constant 2 : index
    %c0_142 = arith.constant 0 : index
    %289 = vector.load %arg5[%c7_140, %c2_141, %c0_142] : memref<9x8x128xf32, #tpu.memory_space<vmem>>, vector<1x1x128xf32>
    %290 = vector.shape_cast %289 : vector<1x1x128xf32> to vector<1x128xf32>
    %c8_143 = arith.constant 8 : index
    %c2_144 = arith.constant 2 : index
    %c0_145 = arith.constant 0 : index
    %291 = vector.load %arg5[%c8_143, %c2_144, %c0_145] : memref<9x8x128xf32, #tpu.memory_space<vmem>>, vector<1x1x128xf32>
    %292 = vector.shape_cast %291 : vector<1x1x128xf32> to vector<1x128xf32>
    %293 = arith.mulf %195, %276 : vector<1x128xf32>
    %294 = arith.mulf %200, %282 : vector<1x128xf32>
    %295 = arith.addf %293, %294 : vector<1x128xf32>
    %296 = arith.mulf %205, %288 : vector<1x128xf32>
    %297 = arith.addf %295, %296 : vector<1x128xf32>
    %298 = arith.mulf %195, %278 : vector<1x128xf32>
    %299 = arith.mulf %200, %284 : vector<1x128xf32>
    %300 = arith.addf %298, %299 : vector<1x128xf32>
    %301 = arith.mulf %205, %290 : vector<1x128xf32>
    %302 = arith.addf %300, %301 : vector<1x128xf32>
    %303 = arith.mulf %195, %280 : vector<1x128xf32>
    %304 = arith.mulf %200, %286 : vector<1x128xf32>
    %305 = arith.addf %303, %304 : vector<1x128xf32>
    %306 = arith.mulf %205, %292 : vector<1x128xf32>
    %307 = arith.addf %305, %306 : vector<1x128xf32>
    %308 = arith.mulf %210, %276 : vector<1x128xf32>
    %309 = arith.mulf %215, %282 : vector<1x128xf32>
    %310 = arith.addf %308, %309 : vector<1x128xf32>
    %311 = arith.mulf %220, %288 : vector<1x128xf32>
    %312 = arith.addf %310, %311 : vector<1x128xf32>
    %313 = arith.mulf %210, %278 : vector<1x128xf32>
    %314 = arith.mulf %215, %284 : vector<1x128xf32>
    %315 = arith.addf %313, %314 : vector<1x128xf32>
    %316 = arith.mulf %220, %290 : vector<1x128xf32>
    %317 = arith.addf %315, %316 : vector<1x128xf32>
    %318 = arith.mulf %210, %280 : vector<1x128xf32>
    %319 = arith.mulf %215, %286 : vector<1x128xf32>
    %320 = arith.addf %318, %319 : vector<1x128xf32>
    %321 = arith.mulf %220, %292 : vector<1x128xf32>
    %322 = arith.addf %320, %321 : vector<1x128xf32>
    %323 = arith.mulf %225, %276 : vector<1x128xf32>
    %324 = arith.mulf %230, %282 : vector<1x128xf32>
    %325 = arith.addf %323, %324 : vector<1x128xf32>
    %326 = arith.mulf %235, %288 : vector<1x128xf32>
    %327 = arith.addf %325, %326 : vector<1x128xf32>
    %328 = arith.mulf %225, %278 : vector<1x128xf32>
    %329 = arith.mulf %230, %284 : vector<1x128xf32>
    %330 = arith.addf %328, %329 : vector<1x128xf32>
    %331 = arith.mulf %235, %290 : vector<1x128xf32>
    %332 = arith.addf %330, %331 : vector<1x128xf32>
    %333 = arith.mulf %225, %280 : vector<1x128xf32>
    %334 = arith.mulf %230, %286 : vector<1x128xf32>
    %335 = arith.addf %333, %334 : vector<1x128xf32>
    %336 = arith.mulf %235, %292 : vector<1x128xf32>
    %337 = arith.addf %335, %336 : vector<1x128xf32>
    %c0_146 = arith.constant 0 : index
    %c2_147 = arith.constant 2 : index
    %c0_148 = arith.constant 0 : index
    %338 = vector.load %arg4[%c0_146, %c2_147, %c0_148] : memref<3x8x128xf32, #tpu.memory_space<vmem>>, vector<1x1x128xf32>
    %339 = vector.shape_cast %338 : vector<1x1x128xf32> to vector<1x128xf32>
    %340 = vector.shape_cast %256 : vector<1x128xf32> to vector<1x1x128xf32>
    tpu.vector_store %arg4[%c0_146, %c2_147, %c0_148], %340 {strides = array<i32>} : memref<3x8x128xf32, #tpu.memory_space<vmem>>, vector<1x1x128xf32>,
    %c1_149 = arith.constant 1 : index
    %c2_150 = arith.constant 2 : index
    %c0_151 = arith.constant 0 : index
    %341 = vector.load %arg4[%c1_149, %c2_150, %c0_151] : memref<3x8x128xf32, #tpu.memory_space<vmem>>, vector<1x1x128xf32>
    %342 = vector.shape_cast %341 : vector<1x1x128xf32> to vector<1x128xf32>
    %343 = vector.shape_cast %265 : vector<1x128xf32> to vector<1x1x128xf32>
    tpu.vector_store %arg4[%c1_149, %c2_150, %c0_151], %343 {strides = array<i32>} : memref<3x8x128xf32, #tpu.memory_space<vmem>>, vector<1x1x128xf32>,
    %c2_152 = arith.constant 2 : index
    %c2_153 = arith.constant 2 : index
    %c0_154 = arith.constant 0 : index
    %344 = vector.load %arg4[%c2_152, %c2_153, %c0_154] : memref<3x8x128xf32, #tpu.memory_space<vmem>>, vector<1x1x128xf32>
    %345 = vector.shape_cast %344 : vector<1x1x128xf32> to vector<1x128xf32>
    %346 = vector.shape_cast %274 : vector<1x128xf32> to vector<1x1x128xf32>
    tpu.vector_store %arg4[%c2_152, %c2_153, %c0_154], %346 {strides = array<i32>} : memref<3x8x128xf32, #tpu.memory_space<vmem>>, vector<1x1x128xf32>,
    %c9 = arith.constant 9 : index
    %347 = memref.load %arg2[%c9] : memref<24xf32, #tpu.memory_space<smem>>
    %c10 = arith.constant 10 : index
    %348 = memref.load %arg2[%c10] : memref<24xf32, #tpu.memory_space<smem>>
    %c11 = arith.constant 11 : index
    %349 = memref.load %arg2[%c11] : memref<24xf32, #tpu.memory_space<smem>>
    %350 = vector.broadcast %347 : f32 to vector<1x128xf32>
    %351 = arith.mulf %297, %350 : vector<1x128xf32>
    %352 = vector.broadcast %348 : f32 to vector<1x128xf32>
    %353 = arith.mulf %302, %352 : vector<1x128xf32>
    %354 = arith.addf %351, %353 : vector<1x128xf32>
    %355 = vector.broadcast %349 : f32 to vector<1x128xf32>
    %356 = arith.mulf %307, %355 : vector<1x128xf32>
    %357 = arith.addf %354, %356 : vector<1x128xf32>
    %358 = arith.addf %357, %256 : vector<1x128xf32>
    %359 = vector.broadcast %347 : f32 to vector<1x128xf32>
    %360 = arith.mulf %312, %359 : vector<1x128xf32>
    %361 = vector.broadcast %348 : f32 to vector<1x128xf32>
    %362 = arith.mulf %317, %361 : vector<1x128xf32>
    %363 = arith.addf %360, %362 : vector<1x128xf32>
    %364 = vector.broadcast %349 : f32 to vector<1x128xf32>
    %365 = arith.mulf %322, %364 : vector<1x128xf32>
    %366 = arith.addf %363, %365 : vector<1x128xf32>
    %367 = arith.addf %366, %265 : vector<1x128xf32>
    %368 = vector.broadcast %347 : f32 to vector<1x128xf32>
    %369 = arith.mulf %327, %368 : vector<1x128xf32>
    %370 = vector.broadcast %348 : f32 to vector<1x128xf32>
    %371 = arith.mulf %332, %370 : vector<1x128xf32>
    %372 = arith.addf %369, %371 : vector<1x128xf32>
    %373 = vector.broadcast %349 : f32 to vector<1x128xf32>
    %374 = arith.mulf %337, %373 : vector<1x128xf32>
    %375 = arith.addf %372, %374 : vector<1x128xf32>
    %376 = arith.addf %375, %274 : vector<1x128xf32>
    %c0_155 = arith.constant 0 : index
    %c3_156 = arith.constant 3 : index
    %c0_157 = arith.constant 0 : index
    %377 = vector.load %arg4[%c0_155, %c3_156, %c0_157] : memref<3x8x128xf32, #tpu.memory_space<vmem>>, vector<1x1x128xf32>
    %378 = vector.shape_cast %377 : vector<1x1x128xf32> to vector<1x128xf32>
    %379 = vector.shape_cast %358 : vector<1x128xf32> to vector<1x1x128xf32>
    tpu.vector_store %arg4[%c0_155, %c3_156, %c0_157], %379 {strides = array<i32>} : memref<3x8x128xf32, #tpu.memory_space<vmem>>, vector<1x1x128xf32>,
    %c1_158 = arith.constant 1 : index
    %c3_159 = arith.constant 3 : index
    %c0_160 = arith.constant 0 : index
    %380 = vector.load %arg4[%c1_158, %c3_159, %c0_160] : memref<3x8x128xf32, #tpu.memory_space<vmem>>, vector<1x1x128xf32>
    %381 = vector.shape_cast %380 : vector<1x1x128xf32> to vector<1x128xf32>
    %382 = vector.shape_cast %367 : vector<1x128xf32> to vector<1x1x128xf32>
    tpu.vector_store %arg4[%c1_158, %c3_159, %c0_160], %382 {strides = array<i32>} : memref<3x8x128xf32, #tpu.memory_space<vmem>>, vector<1x1x128xf32>,
    %c2_161 = arith.constant 2 : index
    %c3_162 = arith.constant 3 : index
    %c0_163 = arith.constant 0 : index
    %383 = vector.load %arg4[%c2_161, %c3_162, %c0_163] : memref<3x8x128xf32, #tpu.memory_space<vmem>>, vector<1x1x128xf32>
    %384 = vector.shape_cast %383 : vector<1x1x128xf32> to vector<1x128xf32>
    %385 = vector.shape_cast %376 : vector<1x128xf32> to vector<1x1x128xf32>
    tpu.vector_store %arg4[%c2_161, %c3_162, %c0_163], %385 {strides = array<i32>} : memref<3x8x128xf32, #tpu.memory_space<vmem>>, vector<1x1x128xf32>,
    %c12 = arith.constant 12 : index
    %386 = memref.load %arg2[%c12] : memref<24xf32, #tpu.memory_space<smem>>
    %c13 = arith.constant 13 : index
    %387 = memref.load %arg2[%c13] : memref<24xf32, #tpu.memory_space<smem>>
    %c14 = arith.constant 14 : index
    %388 = memref.load %arg2[%c14] : memref<24xf32, #tpu.memory_space<smem>>
    %389 = vector.broadcast %386 : f32 to vector<1x128xf32>
    %390 = arith.mulf %117, %389 : vector<1x128xf32>
    %391 = vector.broadcast %387 : f32 to vector<1x128xf32>
    %392 = arith.mulf %119, %391 : vector<1x128xf32>
    %393 = arith.addf %390, %392 : vector<1x128xf32>
    %394 = vector.broadcast %388 : f32 to vector<1x128xf32>
    %395 = arith.mulf %121, %394 : vector<1x128xf32>
    %396 = arith.addf %393, %395 : vector<1x128xf32>
    %397 = arith.addf %396, %111 : vector<1x128xf32>
    %398 = vector.broadcast %386 : f32 to vector<1x128xf32>
    %399 = arith.mulf %123, %398 : vector<1x128xf32>
    %400 = vector.broadcast %387 : f32 to vector<1x128xf32>
    %401 = arith.mulf %125, %400 : vector<1x128xf32>
    %402 = arith.addf %399, %401 : vector<1x128xf32>
    %403 = vector.broadcast %388 : f32 to vector<1x128xf32>
    %404 = arith.mulf %127, %403 : vector<1x128xf32>
    %405 = arith.addf %402, %404 : vector<1x128xf32>
    %406 = arith.addf %405, %113 : vector<1x128xf32>
    %407 = vector.broadcast %386 : f32 to vector<1x128xf32>
    %408 = arith.mulf %129, %407 : vector<1x128xf32>
    %409 = vector.broadcast %387 : f32 to vector<1x128xf32>
    %410 = arith.mulf %131, %409 : vector<1x128xf32>
    %411 = arith.addf %408, %410 : vector<1x128xf32>
    %412 = vector.broadcast %388 : f32 to vector<1x128xf32>
    %413 = arith.mulf %133, %412 : vector<1x128xf32>
    %414 = arith.addf %411, %413 : vector<1x128xf32>
    %415 = arith.addf %414, %115 : vector<1x128xf32>
    %c0_164 = arith.constant 0 : index
    %c4_165 = arith.constant 4 : index
    %c0_166 = arith.constant 0 : index
    %416 = vector.load %arg5[%c0_164, %c4_165, %c0_166] : memref<9x8x128xf32, #tpu.memory_space<vmem>>, vector<1x1x128xf32>
    %417 = vector.shape_cast %416 : vector<1x1x128xf32> to vector<1x128xf32>
    %c1_167 = arith.constant 1 : index
    %c4_168 = arith.constant 4 : index
    %c0_169 = arith.constant 0 : index
    %418 = vector.load %arg5[%c1_167, %c4_168, %c0_169] : memref<9x8x128xf32, #tpu.memory_space<vmem>>, vector<1x1x128xf32>
    %419 = vector.shape_cast %418 : vector<1x1x128xf32> to vector<1x128xf32>
    %c2_170 = arith.constant 2 : index
    %c4_171 = arith.constant 4 : index
    %c0_172 = arith.constant 0 : index
    %420 = vector.load %arg5[%c2_170, %c4_171, %c0_172] : memref<9x8x128xf32, #tpu.memory_space<vmem>>, vector<1x1x128xf32>
    %421 = vector.shape_cast %420 : vector<1x1x128xf32> to vector<1x128xf32>
    %c3_173 = arith.constant 3 : index
    %c4_174 = arith.constant 4 : index
    %c0_175 = arith.constant 0 : index
    %422 = vector.load %arg5[%c3_173, %c4_174, %c0_175] : memref<9x8x128xf32, #tpu.memory_space<vmem>>, vector<1x1x128xf32>
    %423 = vector.shape_cast %422 : vector<1x1x128xf32> to vector<1x128xf32>
    %c4_176 = arith.constant 4 : index
    %c4_177 = arith.constant 4 : index
    %c0_178 = arith.constant 0 : index
    %424 = vector.load %arg5[%c4_176, %c4_177, %c0_178] : memref<9x8x128xf32, #tpu.memory_space<vmem>>, vector<1x1x128xf32>
    %425 = vector.shape_cast %424 : vector<1x1x128xf32> to vector<1x128xf32>
    %c5_179 = arith.constant 5 : index
    %c4_180 = arith.constant 4 : index
    %c0_181 = arith.constant 0 : index
    %426 = vector.load %arg5[%c5_179, %c4_180, %c0_181] : memref<9x8x128xf32, #tpu.memory_space<vmem>>, vector<1x1x128xf32>
    %427 = vector.shape_cast %426 : vector<1x1x128xf32> to vector<1x128xf32>
    %c6_182 = arith.constant 6 : index
    %c4_183 = arith.constant 4 : index
    %c0_184 = arith.constant 0 : index
    %428 = vector.load %arg5[%c6_182, %c4_183, %c0_184] : memref<9x8x128xf32, #tpu.memory_space<vmem>>, vector<1x1x128xf32>
    %429 = vector.shape_cast %428 : vector<1x1x128xf32> to vector<1x128xf32>
    %c7_185 = arith.constant 7 : index
    %c4_186 = arith.constant 4 : index
    %c0_187 = arith.constant 0 : index
    %430 = vector.load %arg5[%c7_185, %c4_186, %c0_187] : memref<9x8x128xf32, #tpu.memory_space<vmem>>, vector<1x1x128xf32>
    %431 = vector.shape_cast %430 : vector<1x1x128xf32> to vector<1x128xf32>
    %c8_188 = arith.constant 8 : index
    %c4_189 = arith.constant 4 : index
    %c0_190 = arith.constant 0 : index
    %432 = vector.load %arg5[%c8_188, %c4_189, %c0_190] : memref<9x8x128xf32, #tpu.memory_space<vmem>>, vector<1x1x128xf32>
    %433 = vector.shape_cast %432 : vector<1x1x128xf32> to vector<1x128xf32>
    %434 = arith.mulf %117, %417 : vector<1x128xf32>
    %435 = arith.mulf %119, %423 : vector<1x128xf32>
    %436 = arith.addf %434, %435 : vector<1x128xf32>
    %437 = arith.mulf %121, %429 : vector<1x128xf32>
    %438 = arith.addf %436, %437 : vector<1x128xf32>
    %439 = arith.mulf %117, %419 : vector<1x128xf32>
    %440 = arith.mulf %119, %425 : vector<1x128xf32>
    %441 = arith.addf %439, %440 : vector<1x128xf32>
    %442 = arith.mulf %121, %431 : vector<1x128xf32>
    %443 = arith.addf %441, %442 : vector<1x128xf32>
    %444 = arith.mulf %117, %421 : vector<1x128xf32>
    %445 = arith.mulf %119, %427 : vector<1x128xf32>
    %446 = arith.addf %444, %445 : vector<1x128xf32>
    %447 = arith.mulf %121, %433 : vector<1x128xf32>
    %448 = arith.addf %446, %447 : vector<1x128xf32>
    %449 = arith.mulf %123, %417 : vector<1x128xf32>
    %450 = arith.mulf %125, %423 : vector<1x128xf32>
    %451 = arith.addf %449, %450 : vector<1x128xf32>
    %452 = arith.mulf %127, %429 : vector<1x128xf32>
    %453 = arith.addf %451, %452 : vector<1x128xf32>
    %454 = arith.mulf %123, %419 : vector<1x128xf32>
    %455 = arith.mulf %125, %425 : vector<1x128xf32>
    %456 = arith.addf %454, %455 : vector<1x128xf32>
    %457 = arith.mulf %127, %431 : vector<1x128xf32>
    %458 = arith.addf %456, %457 : vector<1x128xf32>
    %459 = arith.mulf %123, %421 : vector<1x128xf32>
    %460 = arith.mulf %125, %427 : vector<1x128xf32>
    %461 = arith.addf %459, %460 : vector<1x128xf32>
    %462 = arith.mulf %127, %433 : vector<1x128xf32>
    %463 = arith.addf %461, %462 : vector<1x128xf32>
    %464 = arith.mulf %129, %417 : vector<1x128xf32>
    %465 = arith.mulf %131, %423 : vector<1x128xf32>
    %466 = arith.addf %464, %465 : vector<1x128xf32>
    %467 = arith.mulf %133, %429 : vector<1x128xf32>
    %468 = arith.addf %466, %467 : vector<1x128xf32>
    %469 = arith.mulf %129, %419 : vector<1x128xf32>
    %470 = arith.mulf %131, %425 : vector<1x128xf32>
    %471 = arith.addf %469, %470 : vector<1x128xf32>
    %472 = arith.mulf %133, %431 : vector<1x128xf32>
    %473 = arith.addf %471, %472 : vector<1x128xf32>
    %474 = arith.mulf %129, %421 : vector<1x128xf32>
    %475 = arith.mulf %131, %427 : vector<1x128xf32>
    %476 = arith.addf %474, %475 : vector<1x128xf32>
    %477 = arith.mulf %133, %433 : vector<1x128xf32>
    %478 = arith.addf %476, %477 : vector<1x128xf32>
    %c0_191 = arith.constant 0 : index
    %c4_192 = arith.constant 4 : index
    %c0_193 = arith.constant 0 : index
    %479 = vector.load %arg4[%c0_191, %c4_192, %c0_193] : memref<3x8x128xf32, #tpu.memory_space<vmem>>, vector<1x1x128xf32>
    %480 = vector.shape_cast %479 : vector<1x1x128xf32> to vector<1x128xf32>
    %481 = vector.shape_cast %397 : vector<1x128xf32> to vector<1x1x128xf32>
    tpu.vector_store %arg4[%c0_191, %c4_192, %c0_193], %481 {strides = array<i32>} : memref<3x8x128xf32, #tpu.memory_space<vmem>>, vector<1x1x128xf32>,
    %c1_194 = arith.constant 1 : index
    %c4_195 = arith.constant 4 : index
    %c0_196 = arith.constant 0 : index
    %482 = vector.load %arg4[%c1_194, %c4_195, %c0_196] : memref<3x8x128xf32, #tpu.memory_space<vmem>>, vector<1x1x128xf32>
    %483 = vector.shape_cast %482 : vector<1x1x128xf32> to vector<1x128xf32>
    %484 = vector.shape_cast %406 : vector<1x128xf32> to vector<1x1x128xf32>
    tpu.vector_store %arg4[%c1_194, %c4_195, %c0_196], %484 {strides = array<i32>} : memref<3x8x128xf32, #tpu.memory_space<vmem>>, vector<1x1x128xf32>,
    %c2_197 = arith.constant 2 : index
    %c4_198 = arith.constant 4 : index
    %c0_199 = arith.constant 0 : index
    %485 = vector.load %arg4[%c2_197, %c4_198, %c0_199] : memref<3x8x128xf32, #tpu.memory_space<vmem>>, vector<1x1x128xf32>
    %486 = vector.shape_cast %485 : vector<1x1x128xf32> to vector<1x128xf32>
    %487 = vector.shape_cast %415 : vector<1x128xf32> to vector<1x1x128xf32>
    tpu.vector_store %arg4[%c2_197, %c4_198, %c0_199], %487 {strides = array<i32>} : memref<3x8x128xf32, #tpu.memory_space<vmem>>, vector<1x1x128xf32>,
    %c15 = arith.constant 15 : index
    %488 = memref.load %arg2[%c15] : memref<24xf32, #tpu.memory_space<smem>>
    %c16 = arith.constant 16 : index
    %489 = memref.load %arg2[%c16] : memref<24xf32, #tpu.memory_space<smem>>
    %c17 = arith.constant 17 : index
    %490 = memref.load %arg2[%c17] : memref<24xf32, #tpu.memory_space<smem>>
    %491 = vector.broadcast %488 : f32 to vector<1x128xf32>
    %492 = arith.mulf %438, %491 : vector<1x128xf32>
    %493 = vector.broadcast %489 : f32 to vector<1x128xf32>
    %494 = arith.mulf %443, %493 : vector<1x128xf32>
    %495 = arith.addf %492, %494 : vector<1x128xf32>
    %496 = vector.broadcast %490 : f32 to vector<1x128xf32>
    %497 = arith.mulf %448, %496 : vector<1x128xf32>
    %498 = arith.addf %495, %497 : vector<1x128xf32>
    %499 = arith.addf %498, %397 : vector<1x128xf32>
    %500 = vector.broadcast %488 : f32 to vector<1x128xf32>
    %501 = arith.mulf %453, %500 : vector<1x128xf32>
    %502 = vector.broadcast %489 : f32 to vector<1x128xf32>
    %503 = arith.mulf %458, %502 : vector<1x128xf32>
    %504 = arith.addf %501, %503 : vector<1x128xf32>
    %505 = vector.broadcast %490 : f32 to vector<1x128xf32>
    %506 = arith.mulf %463, %505 : vector<1x128xf32>
    %507 = arith.addf %504, %506 : vector<1x128xf32>
    %508 = arith.addf %507, %406 : vector<1x128xf32>
    %509 = vector.broadcast %488 : f32 to vector<1x128xf32>
    %510 = arith.mulf %468, %509 : vector<1x128xf32>
    %511 = vector.broadcast %489 : f32 to vector<1x128xf32>
    %512 = arith.mulf %473, %511 : vector<1x128xf32>
    %513 = arith.addf %510, %512 : vector<1x128xf32>
    %514 = vector.broadcast %490 : f32 to vector<1x128xf32>
    %515 = arith.mulf %478, %514 : vector<1x128xf32>
    %516 = arith.addf %513, %515 : vector<1x128xf32>
    %517 = arith.addf %516, %415 : vector<1x128xf32>
    %c0_200 = arith.constant 0 : index
    %c5_201 = arith.constant 5 : index
    %c0_202 = arith.constant 0 : index
    %518 = vector.load %arg4[%c0_200, %c5_201, %c0_202] : memref<3x8x128xf32, #tpu.memory_space<vmem>>, vector<1x1x128xf32>
    %519 = vector.shape_cast %518 : vector<1x1x128xf32> to vector<1x128xf32>
    %520 = vector.shape_cast %499 : vector<1x128xf32> to vector<1x1x128xf32>
    tpu.vector_store %arg4[%c0_200, %c5_201, %c0_202], %520 {strides = array<i32>} : memref<3x8x128xf32, #tpu.memory_space<vmem>>, vector<1x1x128xf32>,
    %c1_203 = arith.constant 1 : index
    %c5_204 = arith.constant 5 : index
    %c0_205 = arith.constant 0 : index
    %521 = vector.load %arg4[%c1_203, %c5_204, %c0_205] : memref<3x8x128xf32, #tpu.memory_space<vmem>>, vector<1x1x128xf32>
    %522 = vector.shape_cast %521 : vector<1x1x128xf32> to vector<1x128xf32>
    %523 = vector.shape_cast %508 : vector<1x128xf32> to vector<1x1x128xf32>
    tpu.vector_store %arg4[%c1_203, %c5_204, %c0_205], %523 {strides = array<i32>} : memref<3x8x128xf32, #tpu.memory_space<vmem>>, vector<1x1x128xf32>,
    %c2_206 = arith.constant 2 : index
    %c5_207 = arith.constant 5 : index
    %c0_208 = arith.constant 0 : index
    %524 = vector.load %arg4[%c2_206, %c5_207, %c0_208] : memref<3x8x128xf32, #tpu.memory_space<vmem>>, vector<1x1x128xf32>
    %525 = vector.shape_cast %524 : vector<1x1x128xf32> to vector<1x128xf32>
    %526 = vector.shape_cast %517 : vector<1x128xf32> to vector<1x1x128xf32>
    tpu.vector_store %arg4[%c2_206, %c5_207, %c0_208], %526 {strides = array<i32>} : memref<3x8x128xf32, #tpu.memory_space<vmem>>, vector<1x1x128xf32>,
    %c18 = arith.constant 18 : index
    %527 = memref.load %arg2[%c18] : memref<24xf32, #tpu.memory_space<smem>>
    %c19 = arith.constant 19 : index
    %528 = memref.load %arg2[%c19] : memref<24xf32, #tpu.memory_space<smem>>
    %c20 = arith.constant 20 : index
    %529 = memref.load %arg2[%c20] : memref<24xf32, #tpu.memory_space<smem>>
    %530 = vector.broadcast %527 : f32 to vector<1x128xf32>
    %531 = arith.mulf %117, %530 : vector<1x128xf32>
    %532 = vector.broadcast %528 : f32 to vector<1x128xf32>
    %533 = arith.mulf %119, %532 : vector<1x128xf32>
    %534 = arith.addf %531, %533 : vector<1x128xf32>
    %535 = vector.broadcast %529 : f32 to vector<1x128xf32>
    %536 = arith.mulf %121, %535 : vector<1x128xf32>
    %537 = arith.addf %534, %536 : vector<1x128xf32>
    %538 = arith.addf %537, %111 : vector<1x128xf32>
    %539 = vector.broadcast %527 : f32 to vector<1x128xf32>
    %540 = arith.mulf %123, %539 : vector<1x128xf32>
    %541 = vector.broadcast %528 : f32 to vector<1x128xf32>
    %542 = arith.mulf %125, %541 : vector<1x128xf32>
    %543 = arith.addf %540, %542 : vector<1x128xf32>
    %544 = vector.broadcast %529 : f32 to vector<1x128xf32>
    %545 = arith.mulf %127, %544 : vector<1x128xf32>
    %546 = arith.addf %543, %545 : vector<1x128xf32>
    %547 = arith.addf %546, %113 : vector<1x128xf32>
    %548 = vector.broadcast %527 : f32 to vector<1x128xf32>
    %549 = arith.mulf %129, %548 : vector<1x128xf32>
    %550 = vector.broadcast %528 : f32 to vector<1x128xf32>
    %551 = arith.mulf %131, %550 : vector<1x128xf32>
    %552 = arith.addf %549, %551 : vector<1x128xf32>
    %553 = vector.broadcast %529 : f32 to vector<1x128xf32>
    %554 = arith.mulf %133, %553 : vector<1x128xf32>
    %555 = arith.addf %552, %554 : vector<1x128xf32>
    %556 = arith.addf %555, %115 : vector<1x128xf32>
    %c0_209 = arith.constant 0 : index
    %c6_210 = arith.constant 6 : index
    %c0_211 = arith.constant 0 : index
    %557 = vector.load %arg5[%c0_209, %c6_210, %c0_211] : memref<9x8x128xf32, #tpu.memory_space<vmem>>, vector<1x1x128xf32>
    %558 = vector.shape_cast %557 : vector<1x1x128xf32> to vector<1x128xf32>
    %c1_212 = arith.constant 1 : index
    %c6_213 = arith.constant 6 : index
    %c0_214 = arith.constant 0 : index
    %559 = vector.load %arg5[%c1_212, %c6_213, %c0_214] : memref<9x8x128xf32, #tpu.memory_space<vmem>>, vector<1x1x128xf32>
    %560 = vector.shape_cast %559 : vector<1x1x128xf32> to vector<1x128xf32>
    %c2_215 = arith.constant 2 : index
    %c6_216 = arith.constant 6 : index
    %c0_217 = arith.constant 0 : index
    %561 = vector.load %arg5[%c2_215, %c6_216, %c0_217] : memref<9x8x128xf32, #tpu.memory_space<vmem>>, vector<1x1x128xf32>
    %562 = vector.shape_cast %561 : vector<1x1x128xf32> to vector<1x128xf32>
    %c3_218 = arith.constant 3 : index
    %c6_219 = arith.constant 6 : index
    %c0_220 = arith.constant 0 : index
    %563 = vector.load %arg5[%c3_218, %c6_219, %c0_220] : memref<9x8x128xf32, #tpu.memory_space<vmem>>, vector<1x1x128xf32>
    %564 = vector.shape_cast %563 : vector<1x1x128xf32> to vector<1x128xf32>
    %c4_221 = arith.constant 4 : index
    %c6_222 = arith.constant 6 : index
    %c0_223 = arith.constant 0 : index
    %565 = vector.load %arg5[%c4_221, %c6_222, %c0_223] : memref<9x8x128xf32, #tpu.memory_space<vmem>>, vector<1x1x128xf32>
    %566 = vector.shape_cast %565 : vector<1x1x128xf32> to vector<1x128xf32>
    %c5_224 = arith.constant 5 : index
    %c6_225 = arith.constant 6 : index
    %c0_226 = arith.constant 0 : index
    %567 = vector.load %arg5[%c5_224, %c6_225, %c0_226] : memref<9x8x128xf32, #tpu.memory_space<vmem>>, vector<1x1x128xf32>
    %568 = vector.shape_cast %567 : vector<1x1x128xf32> to vector<1x128xf32>
    %c6_227 = arith.constant 6 : index
    %c6_228 = arith.constant 6 : index
    %c0_229 = arith.constant 0 : index
    %569 = vector.load %arg5[%c6_227, %c6_228, %c0_229] : memref<9x8x128xf32, #tpu.memory_space<vmem>>, vector<1x1x128xf32>
    %570 = vector.shape_cast %569 : vector<1x1x128xf32> to vector<1x128xf32>
    %c7_230 = arith.constant 7 : index
    %c6_231 = arith.constant 6 : index
    %c0_232 = arith.constant 0 : index
    %571 = vector.load %arg5[%c7_230, %c6_231, %c0_232] : memref<9x8x128xf32, #tpu.memory_space<vmem>>, vector<1x1x128xf32>
    %572 = vector.shape_cast %571 : vector<1x1x128xf32> to vector<1x128xf32>
    %c8_233 = arith.constant 8 : index
    %c6_234 = arith.constant 6 : index
    %c0_235 = arith.constant 0 : index
    %573 = vector.load %arg5[%c8_233, %c6_234, %c0_235] : memref<9x8x128xf32, #tpu.memory_space<vmem>>, vector<1x1x128xf32>
    %574 = vector.shape_cast %573 : vector<1x1x128xf32> to vector<1x128xf32>
    %575 = arith.mulf %117, %558 : vector<1x128xf32>
    %576 = arith.mulf %119, %564 : vector<1x128xf32>
    %577 = arith.addf %575, %576 : vector<1x128xf32>
    %578 = arith.mulf %121, %570 : vector<1x128xf32>
    %579 = arith.addf %577, %578 : vector<1x128xf32>
    %580 = arith.mulf %117, %560 : vector<1x128xf32>
    %581 = arith.mulf %119, %566 : vector<1x128xf32>
    %582 = arith.addf %580, %581 : vector<1x128xf32>
    %583 = arith.mulf %121, %572 : vector<1x128xf32>
    %584 = arith.addf %582, %583 : vector<1x128xf32>
    %585 = arith.mulf %117, %562 : vector<1x128xf32>
    %586 = arith.mulf %119, %568 : vector<1x128xf32>
    %587 = arith.addf %585, %586 : vector<1x128xf32>
    %588 = arith.mulf %121, %574 : vector<1x128xf32>
    %589 = arith.addf %587, %588 : vector<1x128xf32>
    %590 = arith.mulf %123, %558 : vector<1x128xf32>
    %591 = arith.mulf %125, %564 : vector<1x128xf32>
    %592 = arith.addf %590, %591 : vector<1x128xf32>
    %593 = arith.mulf %127, %570 : vector<1x128xf32>
    %594 = arith.addf %592, %593 : vector<1x128xf32>
    %595 = arith.mulf %123, %560 : vector<1x128xf32>
    %596 = arith.mulf %125, %566 : vector<1x128xf32>
    %597 = arith.addf %595, %596 : vector<1x128xf32>
    %598 = arith.mulf %127, %572 : vector<1x128xf32>
    %599 = arith.addf %597, %598 : vector<1x128xf32>
    %600 = arith.mulf %123, %562 : vector<1x128xf32>
    %601 = arith.mulf %125, %568 : vector<1x128xf32>
    %602 = arith.addf %600, %601 : vector<1x128xf32>
    %603 = arith.mulf %127, %574 : vector<1x128xf32>
    %604 = arith.addf %602, %603 : vector<1x128xf32>
    %605 = arith.mulf %129, %558 : vector<1x128xf32>
    %606 = arith.mulf %131, %564 : vector<1x128xf32>
    %607 = arith.addf %605, %606 : vector<1x128xf32>
    %608 = arith.mulf %133, %570 : vector<1x128xf32>
    %609 = arith.addf %607, %608 : vector<1x128xf32>
    %610 = arith.mulf %129, %560 : vector<1x128xf32>
    %611 = arith.mulf %131, %566 : vector<1x128xf32>
    %612 = arith.addf %610, %611 : vector<1x128xf32>
    %613 = arith.mulf %133, %572 : vector<1x128xf32>
    %614 = arith.addf %612, %613 : vector<1x128xf32>
    %615 = arith.mulf %129, %562 : vector<1x128xf32>
    %616 = arith.mulf %131, %568 : vector<1x128xf32>
    %617 = arith.addf %615, %616 : vector<1x128xf32>
    %618 = arith.mulf %133, %574 : vector<1x128xf32>
    %619 = arith.addf %617, %618 : vector<1x128xf32>
    %c0_236 = arith.constant 0 : index
    %c6_237 = arith.constant 6 : index
    %c0_238 = arith.constant 0 : index
    %620 = vector.load %arg4[%c0_236, %c6_237, %c0_238] : memref<3x8x128xf32, #tpu.memory_space<vmem>>, vector<1x1x128xf32>
    %621 = vector.shape_cast %620 : vector<1x1x128xf32> to vector<1x128xf32>
    %622 = vector.shape_cast %538 : vector<1x128xf32> to vector<1x1x128xf32>
    tpu.vector_store %arg4[%c0_236, %c6_237, %c0_238], %622 {strides = array<i32>} : memref<3x8x128xf32, #tpu.memory_space<vmem>>, vector<1x1x128xf32>,
    %c1_239 = arith.constant 1 : index
    %c6_240 = arith.constant 6 : index
    %c0_241 = arith.constant 0 : index
    %623 = vector.load %arg4[%c1_239, %c6_240, %c0_241] : memref<3x8x128xf32, #tpu.memory_space<vmem>>, vector<1x1x128xf32>
    %624 = vector.shape_cast %623 : vector<1x1x128xf32> to vector<1x128xf32>
    %625 = vector.shape_cast %547 : vector<1x128xf32> to vector<1x1x128xf32>
    tpu.vector_store %arg4[%c1_239, %c6_240, %c0_241], %625 {strides = array<i32>} : memref<3x8x128xf32, #tpu.memory_space<vmem>>, vector<1x1x128xf32>,
    %c2_242 = arith.constant 2 : index
    %c6_243 = arith.constant 6 : index
    %c0_244 = arith.constant 0 : index
    %626 = vector.load %arg4[%c2_242, %c6_243, %c0_244] : memref<3x8x128xf32, #tpu.memory_space<vmem>>, vector<1x1x128xf32>
    %627 = vector.shape_cast %626 : vector<1x1x128xf32> to vector<1x128xf32>
    %628 = vector.shape_cast %556 : vector<1x128xf32> to vector<1x1x128xf32>
    tpu.vector_store %arg4[%c2_242, %c6_243, %c0_244], %628 {strides = array<i32>} : memref<3x8x128xf32, #tpu.memory_space<vmem>>, vector<1x1x128xf32>,
    %c21 = arith.constant 21 : index
    %629 = memref.load %arg2[%c21] : memref<24xf32, #tpu.memory_space<smem>>
    %c22 = arith.constant 22 : index
    %630 = memref.load %arg2[%c22] : memref<24xf32, #tpu.memory_space<smem>>
    %c23 = arith.constant 23 : index
    %631 = memref.load %arg2[%c23] : memref<24xf32, #tpu.memory_space<smem>>
    %632 = vector.broadcast %629 : f32 to vector<1x128xf32>
    %633 = arith.mulf %579, %632 : vector<1x128xf32>
    %634 = vector.broadcast %630 : f32 to vector<1x128xf32>
    %635 = arith.mulf %584, %634 : vector<1x128xf32>
    %636 = arith.addf %633, %635 : vector<1x128xf32>
    %637 = vector.broadcast %631 : f32 to vector<1x128xf32>
    %638 = arith.mulf %589, %637 : vector<1x128xf32>
    %639 = arith.addf %636, %638 : vector<1x128xf32>
    %640 = arith.addf %639, %538 : vector<1x128xf32>
    %641 = vector.broadcast %629 : f32 to vector<1x128xf32>
    %642 = arith.mulf %594, %641 : vector<1x128xf32>
    %643 = vector.broadcast %630 : f32 to vector<1x128xf32>
    %644 = arith.mulf %599, %643 : vector<1x128xf32>
    %645 = arith.addf %642, %644 : vector<1x128xf32>
    %646 = vector.broadcast %631 : f32 to vector<1x128xf32>
    %647 = arith.mulf %604, %646 : vector<1x128xf32>
    %648 = arith.addf %645, %647 : vector<1x128xf32>
    %649 = arith.addf %648, %547 : vector<1x128xf32>
    %650 = vector.broadcast %629 : f32 to vector<1x128xf32>
    %651 = arith.mulf %609, %650 : vector<1x128xf32>
    %652 = vector.broadcast %630 : f32 to vector<1x128xf32>
    %653 = arith.mulf %614, %652 : vector<1x128xf32>
    %654 = arith.addf %651, %653 : vector<1x128xf32>
    %655 = vector.broadcast %631 : f32 to vector<1x128xf32>
    %656 = arith.mulf %619, %655 : vector<1x128xf32>
    %657 = arith.addf %654, %656 : vector<1x128xf32>
    %658 = arith.addf %657, %556 : vector<1x128xf32>
    %c0_245 = arith.constant 0 : index
    %c7_246 = arith.constant 7 : index
    %c0_247 = arith.constant 0 : index
    %659 = vector.load %arg4[%c0_245, %c7_246, %c0_247] : memref<3x8x128xf32, #tpu.memory_space<vmem>>, vector<1x1x128xf32>
    %660 = vector.shape_cast %659 : vector<1x1x128xf32> to vector<1x128xf32>
    %661 = vector.shape_cast %640 : vector<1x128xf32> to vector<1x1x128xf32>
    tpu.vector_store %arg4[%c0_245, %c7_246, %c0_247], %661 {strides = array<i32>} : memref<3x8x128xf32, #tpu.memory_space<vmem>>, vector<1x1x128xf32>,
    %c1_248 = arith.constant 1 : index
    %c7_249 = arith.constant 7 : index
    %c0_250 = arith.constant 0 : index
    %662 = vector.load %arg4[%c1_248, %c7_249, %c0_250] : memref<3x8x128xf32, #tpu.memory_space<vmem>>, vector<1x1x128xf32>
    %663 = vector.shape_cast %662 : vector<1x1x128xf32> to vector<1x128xf32>
    %664 = vector.shape_cast %649 : vector<1x128xf32> to vector<1x1x128xf32>
    tpu.vector_store %arg4[%c1_248, %c7_249, %c0_250], %664 {strides = array<i32>} : memref<3x8x128xf32, #tpu.memory_space<vmem>>, vector<1x1x128xf32>,
    %c2_251 = arith.constant 2 : index
    %c7_252 = arith.constant 7 : index
    %c0_253 = arith.constant 0 : index
    %665 = vector.load %arg4[%c2_251, %c7_252, %c0_253] : memref<3x8x128xf32, #tpu.memory_space<vmem>>, vector<1x1x128xf32>
    %666 = vector.shape_cast %665 : vector<1x1x128xf32> to vector<1x128xf32>
    %667 = vector.shape_cast %658 : vector<1x128xf32> to vector<1x1x128xf32>
    tpu.vector_store %arg4[%c2_251, %c7_252, %c0_253], %667 {strides = array<i32>} : memref<3x8x128xf32, #tpu.memory_space<vmem>>, vector<1x1x128xf32>,
    return
  }
  func.func @transform_0(%arg0: i32) -> (i32, i32, i32) {
    %c0_i32 = arith.constant 0 : i32
    %c0_i32_0 = arith.constant 0 : i32
    %c0_i32_1 = arith.constant 0 : i32
    return %c0_i32, %c0_i32_0, %arg0 : i32, i32, i32
  }
  func.func @transform_1(%arg0: i32) -> i32 {
    %c0_i32 = arith.constant 0 : i32
    %c0_i32_0 = arith.constant 0 : i32
    return %c0_i32 : i32
  }
  func.func @transform_2(%arg0: i32) -> (i32, i32) {
    %c0_i32 = arith.constant 0 : i32
    %c0_i32_0 = arith.constant 0 : i32
    return %c0_i32, %arg0 : i32, i32
  }
  func.func @transform_3(%arg0: i32) -> (i32, i32, i32) {
    %c0_i32 = arith.constant 0 : i32
    %c0_i32_0 = arith.constant 0 : i32
    %c0_i32_1 = arith.constant 0 : i32
    return %c0_i32, %c0_i32_0, %arg0 : i32, i32, i32
  }
}

</mosaic_0001>

<bundles_post_ra>
// kernel: tpu_custom_call.1
= control target key start
LH: loop header
LB: loop body
LE: loop exit
PB: predicated region body
PF: predicated region fallthrough
CT: control target
= control target key end

     0   :  { %8 = vsyncpa [#allocation4], 0  ;;  %s1661_s0 = inlined_call_operand.hbm [shape: f32[3,8,128], index: 0, kind: input, shape index: {}]   ;;  %s1662_s1 = inlined_call_operand.hbm [shape: f32[24], index: 1, kind: input, shape index: {}]   ;;  %s1663_s2 = inlined_call_operand.hbm [shape: f32[3,128], index: 2, kind: input, shape index: {}]   ;;  %s1664_s3 = inlined_call_operand.hbm [shape: f32[3,8,128], index: 3, kind: output, shape index: {}]  }
   0x1   :  { %9 = vsyncpa [#allocation6], 0 }
   0x2   :  { %10 = vsyncpa [#allocation9], 0 }
   0x3   :  { %11 = vsyncpa [#allocation5], 0  ;;  %s16_s14 = sshll.u32 %s1661_s0, 4  ;;  %s1036_s15 = smov [#allocation3]   ;;  %s17_s14 = int_to_ptr.hbm [resolvable:$true] %s16_s14 }
   0x4   :  { %s18_s16 = sshll.u32 %s1036_s15, 4  ;;  %s30_s19 = sshll.u32 %s1662_s1, 4  ;;  %s19_s16 = int_to_ptr.vmem [resolvable:$true] %s18_s16  ;;  %s31_s19 = int_to_ptr.hbm [resolvable:$true] %s30_s19 }
   0x5   :  { %s1037_s20 = smov 128   ;;  %s1038_s21 = smov 8  }
   0x6   :  { %24 = dma.hbm_to_vmem [thread:$0]  %s17_s14, 384, %s19_s16, [#allocation4], %s1037_s20, %s1037_s20, %s1038_s21  }
   0x7   :  { %s1039_s22 = smov [#allocation7]   ;;  %s39_s0 = sshll.u32 %s1663_s2, 4  ;;  %s40_s0 = int_to_ptr.hbm [resolvable:$true] %s39_s0 }
   0x8   :  { %33 = dma.hbm_to_smem %s31_s19, 16, %s1039_s22, [#allocation6]  }
   0x9   :  { %s1040_s25 = smov [#allocation8]  }
   0xa   :  { %s41_s26 = sshll.u32 %s1040_s25, 4  ;;  %s42_s26 = int_to_ptr.vmem [resolvable:$true] %s41_s26 }
   0xb   :  { %44 = dma.hbm_to_vmem [thread:$0]  %s40_s0, 64, %s42_s26, [#allocation9]  }
   0xc   :  { %1028 = dma.done.wait [#allocation4], 384  }
   0xd   :  { %1029 = vsyncadd [#allocation4], 4294966912 }
   0xe   :  { %1030 = dma.done.wait [#allocation6], 16  }
   0xf   :  { %1031 = vsyncadd [#allocation6], 4294967280 }
  0x10   :  { %1032 = dma.done.wait [#allocation9], 64  }
  0x11   :  { %1033 = vsyncadd [#allocation9], 4294967232 }
  0x12   :  { %57 = sfence }
  0x13   :  { %v58_v0 = vld [vmem:[#allocation3] sm:$0xff]  ;;  %v60_v1 = vld [vmem:[#allocation3 + $0x8] sm:$0xff]  ;;  %v62_v2 = vld [vmem:[#allocation3 + $0x10] sm:$0xff]  ;;  %v1041_v33 = vmov 683565275   ;;  %s445_s1 = sld [smem:[#allocation7]] }
  0x14   :  { %v63_v3 = vadd.f32 1e-08, %v58_v0  ;;  %v64_v4 = vadd.f32 1e-08, %v60_v1  ;;  %v65_v5 = vadd.f32 1e-08, %v62_v2 }
  0x15   :  { %v1042_v35 = vmov 2475754826   ;;  %v1043_v37 = vmov 2131351028   ;;  %v1044_v39 = vmov 2102212464  }
  0x16   :  { %v66_v6 = vmul.f32 %v63_v3, %v63_v3  ;;  %v67_v7 = vmul.f32 %v64_v4, %v64_v4  ;;  %v69_v8 = vmul.f32 %v65_v5, %v65_v5  ;;  %v1045_v41 = vmov 920167782   ;;  %s906_s2 = sld [smem:[#allocation7 + $0x1]]  ;;  %s1048_s24 = smov [#allocation10]  }
  0x17   :  { %v1046_v47 = vmov 1326507024   ;;  %s907_s27 = sld [smem:[#allocation7 + $0x2]]  ;;  %s883_s0 = sshll.u32 %s1048_s24, 4  ;;  %s884_s0 = int_to_ptr.vmem [resolvable:$true] %s883_s0 }
  0x18   :  { %v68_v9 = vadd.f32 %v67_v7, %v66_v6  ;;  %s1160_s28 = sld [smem:[#allocation7 + $0x3]] }
  0x19   :  { %s1165_s29 = sld [smem:[#allocation7 + $0x4]] }
  0x1a   :  { %v70_v10 = vadd.f32 %v69_v8, %v68_v9  ;;  %s1169_s30 = sld [smem:[#allocation7 + $0x5]] }
  0x1b   :  { %s1171_s4 = sld [smem:[#allocation7 + $0xc]] }
  0x1c   :  { %942 = vrsqrt.f32 %v70_v10  ;;  %vm77_vm0 = vweird.f32 %v70_v10  ;;  %s1173_s5 = sld [smem:[#allocation7 + $0xd]] }
  0x1d   :  { %s1175_s6 = sld [smem:[#allocation7 + $0xe]] }
  0x1e   :  { %s1177_s7 = sld [smem:[#allocation7 + $0x12]] }
  0x1f   :  { %s1181_s8 = sld [smem:[#allocation7 + $0x13]] }
  0x20   :  { %s1191_s9 = sld [smem:[#allocation7 + $0x14]] }
  0x21   :  { %s1197_s10 = sld [smem:[#allocation7 + $0x6]] }
  0x22   :  { %v943_v11 = vpop.eup %942  ;;  %s1201_s11 = sld [smem:[#allocation7 + $0x7]] }
  0x23   :  { %v72_v12 = vmul.f32 %v943_v11, %v70_v10  ;;  %vm78_vm1 = vweird.f32 %v943_v11  ;;  %s1207_s12 = sld [smem:[#allocation7 + $0x8]] }
  0x24   :  { %vm79_vm2 = vmor %vm77_vm0, %vm78_vm1  ;;  %s1400_s13 = sld [smem:[#allocation7 + $0xf]] }
  0x25   :  { %v73_v13 = vmul.f32 %v943_v11, %v72_v12  ;;  %s1408_s14 = sld [smem:[#allocation7 + $0x10]] }
  0x26   :  { %s1420_s15 = sld [smem:[#allocation7 + $0x11]] }
  0x27   :  { %v74_v14 = vmul.f32 0.5, %v73_v13  ;;  %s1516_s16 = sld [smem:[#allocation7 + $0x15]] }
  0x28   :  { %s1525_s17 = sld [smem:[#allocation7 + $0x16]] }
  0x29   :  { %v75_v15 = vsub.f32 1.5, %v74_v14  ;;  %s1532_s18 = sld [smem:[#allocation7 + $0x17]] }
  0x2a   :  { %s1601_s19 = sld [smem:[#allocation7 + $0x9]] }
  0x2b   :  { %v76_v16 = vmul.f32 %v943_v11, %v75_v15  ;;  %s1606_s22 = sld [smem:[#allocation7 + $0xa]] }
  0x2c   :  { %s1612_s23 = sld [smem:[#allocation7 + $0xb]] }
  0x2d   :  { %v80_v17 = vsel %vm79_vm2, %v943_v11, %v76_v16 }
  0x2e   :  { %v1081_v18 = vmul.f32 %v80_v17, %v70_v10  ;;  %v1083_v19 = vmul.f32 %v80_v17, %v58_v0  ;;  %v1085_v20 = vmul.f32 %v80_v17, %v60_v1  ;;  %v1087_v21 = vmul.f32 %v80_v17, %v62_v2 }
  0x30   :  { %v88_v22 = vand.u32 2139095040, %v1081_v18  ;;  %v85_v24 = vand.u32 2147483647, %v1081_v18  ;;  %vm87_vm15 = vcmp.lt.s32.totalorder %v1081_v18, 0 }
  0x32   :  { %v89_v23 = vshrl.u32 %v88_v22, 23  ;;  %v92_v27 = vand.u32 8388607, %v85_v24  ;;  %vm86_vm0 = vcmp.le.f32.partialorder %v85_v24, 0.7853982 }
  0x34   :  { %v900_v25 = vadd.s32 4294967169, %v89_v23  ;;  %v93_v30 = vor.u32 8388608, %v92_v27 }
  0x36   :  { %v95_v26 = vadd.s32 1, %v900_v25  ;;  %v1096_v49 = vshll.u32 %v93_v30, 8 }
  0x38   :  { %vm96_vm3 = vcmp.gt.s32.totalorder %v95_v26, 0  ;;  %v134_v61 = vand.u32 65535, %v1096_v49  ;;  %v135_v62 = vshrl.u32 %v1096_v49, 16 }
  0x39   :  { %v97_v28 = vsel %vm96_vm3, %v95_v26, 0  ;;  %v1047_v26 = vmov 0  }
  0x3a   :  { %v99_v29 = vand.u32 31, %v97_v28  ;;  %v1093_v31 = vshrl.u32 %v97_v28, 5 }
  0x3c   :  { %v100_v32 = vsub.s32 32, %v99_v29  ;;  %v102_v34 = vshll.u32 %v1041_v33, %v99_v29  ;;  %v105_v36 = vshll.u32 %v1042_v35, %v99_v29  ;;  %v108_v38 = vshll.u32 %v1043_v37, %v99_v29 }
  0x3d   :  { %v111_v40 = vshll.u32 %v1044_v39, %v99_v29  ;;  %v114_v42 = vshll.u32 %v1045_v41, %v99_v29  ;;  %vm117_vm4 = vcmp.lt.s32.totalorder %v1093_v31, 1  ;;  %vm120_vm5 = vcmp.lt.s32.totalorder %v1093_v31, 4 }
  0x3e   :  { %v103_v43 = vshrl.u32 %v1042_v35, %v100_v32  ;;  %v106_v44 = vshrl.u32 %v1043_v37, %v100_v32  ;;  %v109_v45 = vshrl.u32 %v1044_v39, %v100_v32  ;;  %v112_v46 = vshrl.u32 %v1045_v41, %v100_v32 }
  0x3f   :  { %v115_v48 = vshrl.u32 %v1046_v47, %v100_v32  ;;  %vm119_vm6 = vcmp.lt.s32.totalorder %v1093_v31, 3  ;;  %vm118_vm7 = vcmp.lt.s32.totalorder %v1093_v31, 2  ;;  %v101_v5 = vshrl.u32 %v1041_v33, %v100_v32 }
  0x40   :  { %v104_v50 = vor.u32 %v103_v43, %v102_v34  ;;  %v107_v51 = vor.u32 %v106_v44, %v105_v36  ;;  %v110_v52 = vor.u32 %v109_v45, %v108_v38  ;;  %v113_v53 = vor.u32 %v112_v46, %v111_v40 }
  0x41   :  { %v116_v54 = vor.u32 %v115_v48, %v114_v42 }
  0x42   :  { %v125_v55 = vsel %vm117_vm4, %v104_v50, %v107_v51  ;;  %v129_v56 = vsel %vm117_vm4, %v107_v51, %v110_v52  ;;  %v126_v57 = vsel %vm120_vm5, %v113_v53, 920167782  ;;  %v121_v22 = vsel %vm117_vm4, %v101_v5, %v104_v50 }
  0x43   :  { %v130_v58 = vsel %vm120_vm5, %v116_v54, 1326507024  ;;  %v127_v59 = vsel %vm119_vm6, %v110_v52, %v126_v57  ;;  %v122_v25 = vsel %vm120_vm5, %v110_v52, 2102212464  ;;  %v1140_v5 = vmul.f32 %v1087_v21, %v1087_v21 }
  0x44   :  { %v131_v60 = vsel %vm119_vm6, %v113_v53, %v130_v58  ;;  %v128_v63 = vsel %vm118_vm7, %v125_v55, %v127_v59  ;;  %v123_v36 = vsel %vm119_vm6, %v107_v51, %v122_v25 }
  0x45   :  { %v132_v0 = vsel %vm118_vm7, %v129_v56, %v131_v60  ;;  %v158_v3 = vand.u32 65535, %v128_v63  ;;  %v159_v4 = vshrl.u32 %v128_v63, 16  ;;  %v124_v44 = vsel %vm118_vm7, %v121_v22, %v123_v36 }
  0x46   :  { %v136_v1 = vand.u32 65535, %v132_v0  ;;  %v137_v2 = vshrl.u32 %v132_v0, 16  ;;  %v178_v48 = vmul.u32 %v1096_v49, %v124_v44  ;;  %v1130_v49 = vmul.f32 %v1083_v19, %v1083_v19 }
  0x47   :  { %v160_v9 = vmul.u32 %v158_v3, %v134_v61  ;;  %v161_v10 = vmul.u32 %v159_v4, %v134_v61  ;;  %v162_v11 = vmul.u32 %v158_v3, %v135_v62  ;;  %v163_v15 = vmul.u32 %v159_v4, %v135_v62 }
  0x48   :  { %v138_v6 = vmul.u32 %v136_v1, %v134_v61  ;;  %v139_v7 = vmul.u32 %v137_v2, %v134_v61  ;;  %v140_v8 = vmul.u32 %v136_v1, %v135_v62  ;;  %v141_v12 = vmul.u32 %v137_v2, %v135_v62 }
  0x49   :  { %v164_v16 = vshll.u32 %v161_v10, 16  ;;  %v166_v17 = vshll.u32 %v162_v11, 16  ;;  %v165_v34 = vshrl.u32 %v161_v10, 16  ;;  %v167_v40 = vshrl.u32 %v162_v11, 16 }
  0x4a   :  { %v142_v13 = vshll.u32 %v139_v7, 16  ;;  %v144_v14 = vshll.u32 %v140_v8, 16  ;;  %v143_v29 = vshrl.u32 %v139_v7, 16  ;;  %v145_v37 = vshrl.u32 %v140_v8, 16 }
  0x4b   :  { %vm168_vm9 = vc.u32 %v160_v9, %v164_v16  ;;  %v170_v28 = vadd.s32 %v164_v16, %v160_v9  ;;  %v1134_v1 = vmul.f32 %v1085_v20, %v1085_v20  ;;  %vm228_vm7 = vweird.f32 %v1081_v18 }
  0x4c   :  { %vm146_vm8 = vc.u32 %v138_v6, %v142_v13  ;;  %v148_v23 = vadd.s32 %v142_v13, %v138_v6  ;;  %v169_v32 = vsel %vm168_vm9, 1, %v1047_v26 }
  0x4d   :  { %v147_v27 = vsel %vm146_vm8, 1, %v1047_v26  ;;  %v171_v35 = vadd.s32 %v169_v32, %v163_v15  ;;  %vm172_vm11 = vc.u32 %v170_v28, %v166_v17  ;;  %v174_v43 = vadd.s32 %v170_v28, %v166_v17 }
  0x4e   :  { %v149_v30 = vadd.s32 %v147_v27, %v141_v12  ;;  %vm150_vm10 = vc.u32 %v148_v23, %v144_v14  ;;  %v173_v39 = vsel %vm172_vm11, 1, %v1047_v26  ;;  %v397_v4 = vadd.f32 %v1134_v1, %v1130_v49 }
  0x4f   :  { %v151_v33 = vsel %vm150_vm10, 1, %v1047_v26  ;;  %v175_v41 = vadd.s32 %v173_v39, %v171_v35 }
  0x50   :  { %v153_v38 = vadd.s32 %v151_v33, %v149_v30  ;;  %v1143_v8 = vadd.f32 %v1140_v5, %v397_v4 }
  0x51   :  { %v176_v45 = vadd.s32 %v175_v41, %v165_v34  ;;  %v444_v41 = vld [vmem:[#allocation8] sm:$0x7] }
  0x52   :  { %v154_v42 = vadd.s32 %v153_v38, %v143_v29  ;;  %v400_v11 = vsub.f32 %v1130_v49, %v1143_v8  ;;  %v420_v13 = vsub.f32 %v1134_v1, %v1143_v8  ;;  %v439_v17 = vsub.f32 %v1140_v5, %v1143_v8 }
  0x53   :  { %v177_v47 = vadd.s32 %v176_v45, %v167_v40  ;;  %v471_v8 = vstv %s1160_s28 }
  0x54   :  { %v155_v46 = vadd.s32 %v154_v42, %v145_v37  ;;  %v448_v42 = vstv %s445_s1  ;;  %s885_s1 = sshll.u32 %s1664_s3, 4  ;;  %s886_s1 = int_to_ptr.hbm [resolvable:$true] %s885_s1 }
  0x55   :  { %v181_v50 = vadd.s32 1, %v177_v47 }
  0x56   :  { %vm180_vm12 = vc.u32 %v155_v46, %v174_v43  ;;  %v179_v31 = vadd.s32 %v174_v43, %v155_v46  ;;  %v1155_v43 = vadd.f32 %v448_v42, %v444_v41  ;;  %v450_v46 = vstv %s906_s2 }
  0x57   :  { %v182_v52 = vsel %vm180_vm12, %v181_v50, %v177_v47  ;;  %v452_v47 = vstv %s907_s27 }
  0x58   :  { %v183_v53 = vadd.s32 %v182_v52, %v178_v48  ;;  %463 = vst [vmem:[#allocation10] sm:$0x1] %v1155_v43  ;;  %v1158_v48 = vadd.f32 %v450_v46, %v444_v41 }
  0x5a   :  { %v184_v51 = vadd.s32 536870912, %v183_v53  ;;  %465 = vst [vmem:[#allocation10 + $0x7] sm:$0x2] %v1158_v48 }
  0x5c   :  { %v185_v54 = vshrl.u32 %v184_v51, 30 }
  0x5e   :  { %v186_v55 = vshll.u32 %v185_v54, 30  ;;  %v209_v15 = vsub.s32 4, %v185_v54 }
  0x60   :  { %v187_v56 = vsub.s32 %v183_v53, %v186_v55  ;;  %v210_v23 = vsel %vm87_vm15, %v209_v15, %v185_v54  ;;  %v1162_v53 = vadd.f32 %v452_v47, %v444_v41 }
  0x61   :  { %v212_v27 = vsel %vm86_vm0, 0, %v210_v23  ;;  %v476_v23 = vstv %s1169_s30 }
  0x62   :  { %vm188_vm13 = vcmp.lt.s32.totalorder %v187_v56, 0  ;;  %v189_v57 = vsub.s32 0, %v187_v56  ;;  %v383_v33 = vadd.s32 3, %v212_v27  ;;  %v229_v37 = vand.u32 3, %v212_v27  ;;  %467 = vst [vmem:[#allocation10 + $0xe] sm:$0x4] %v1162_v53 }
  0x63   :  { %v1215_v27 = vstv %s1177_s7 }
  0x64   :  { %v190_v58 = vsel %vm188_vm13, %v189_v57, %v187_v56  ;;  %v384_v38 = vand.u32 3, %v383_v33  ;;  %vm234_vm1 = vcmp.eq.s32.totalorder %v229_v37, 2  ;;  %vm230_vm3 = vcmp.lt.s32.totalorder %v229_v37, 2 }
  0x65   :  { %v191_v59 = vclz %v190_v58  ;;  %vm231_vm4 = vcmp.eq.s32.totalorder %v229_v37, 0  ;;  %v1241_v37 = vstv %s1207_s12 }
  0x66   :  { %vm389_vm2 = vcmp.eq.s32.totalorder %v384_v38, 2  ;;  %vm386_vm5 = vcmp.eq.s32.totalorder %v384_v38, 0  ;;  %vm385_vm6 = vcmp.lt.s32.totalorder %v384_v38, 2 }
  0x67   :  { %v901_v60 = vadd.s32 4294967294, %v191_v59 }
  0x69   :  { %vm902_vm14 = vcmp.lt.s32.totalorder %v901_v60, 0 }
  0x6a   :  { %v194_v61 = vsel %vm902_vm14, 0, %v901_v60 }
  0x6b   :  { %v195_v62 = vsub.s32 32, %v194_v61  ;;  %v196_v63 = vshll.u32 %v187_v56, %v194_v61  ;;  %v199_v0 = vsub.s32 4294967266, %v194_v61 }
  0x6d   :  { %v197_v2 = vshrl.u32 %v179_v31, %v195_v62  ;;  %v200_v3 = vadd.s32 127, %v199_v0 }
  0x6f   :  { %v198_v6 = vor.u32 %v197_v2, %v196_v63  ;;  %v201_v7 = vshll.u32 %v200_v3, 23 }
  0x71   :  { %v202_v9 = vor.u32 4788187, %v201_v7  ;;  %v205_v10 = vcvt.s32.f32 %v198_v6 }
  0x73   :  { %v203_v12 = vand.u32 2147483647, %v202_v9 }
  0x75   :  { %v206_v14 = vmul.f32 %v205_v10, %v203_v12 }
  0x77   :  { %v207_v16 = vxor.u32 2147483648, %v206_v14 }
  0x79   :  { %v208_v22 = vsel %vm87_vm15, %v207_v16, %v206_v14 }
  0x7a   :  { %v211_v25 = vsel %vm86_vm0, %v1081_v18, %v208_v22 }
  0x7b   :  { %v213_v26 = vmul.f32 %v211_v25, %v211_v25 }
  0x7d   :  { %v214_v28 = vmul.f32 -0.001358992, %v213_v26  ;;  %v221_v29 = vmul.f32 -0.00019511016, %v213_v26 }
  0x7f   :  { %v215_v30 = vadd.f32 0.041655596, %v214_v28  ;;  %v222_v32 = vadd.f32 0.008332121, %v221_v29  ;;  %v1218_v28 = vrot.slane %v1158_v48, 1  ;;  %v1221_v29 = vrot.slane %v1162_v53, 2 }
  0x81   :  { %v216_v34 = vmul.f32 %v215_v30, %v213_v26  ;;  %v223_v24 = vmul.f32 %v222_v32, %v213_v26  ;;  %v671_v30 = vstv %s1175_s6  ;;  %v1225_v32 = vstv %s1181_s8 }
  0x83   :  { %v217_v35 = vadd.f32 -0.4999988, %v216_v34  ;;  %v224_v36 = vadd.f32 -0.16666654, %v223_v24  ;;  %v1230_v34 = vstv %s1191_s9 }
  0x85   :  { %v218_v39 = vmul.f32 %v217_v35, %v213_v26  ;;  %v225_v40 = vmul.f32 %v224_v36, %v213_v26  ;;  %v668_v26 = vstv %s1173_s5  ;;  %v1235_v35 = vstv %s1197_s10 }
  0x86   :  { %v1238_v36 = vstv %s1201_s11 }
  0x87   :  { %v219_v44 = vadd.f32 1.0, %v218_v39  ;;  %v226_v45 = vadd.f32 1.0, %v225_v40 }
  0x89   :  { %v227_v50 = vmul.f32 %v226_v45, %v211_v25  ;;  %v235_v52 = vxor.u32 2147483648, %v219_v44  ;;  %v666_v25 = vstv %s1171_s4 }
  0x8b   :  { %v232_v51 = vxor.u32 2147483648, %v227_v50  ;;  %v236_v54 = vsel %vm234_vm1, %v235_v52, %v227_v50  ;;  %v391_v55 = vsel %vm389_vm2, %v235_v52, %v227_v50 }
  0x8d   :  { %v233_v56 = vsel %vm231_vm4, %v219_v44, %v232_v51  ;;  %v388_v57 = vsel %vm386_vm5, %v219_v44, %v232_v51 }
  0x8e   :  { %v237_v58 = vsel %vm230_vm3, %v233_v56, %v236_v54  ;;  %v392_v59 = vsel %vm385_vm6, %v388_v57, %v391_v55 }
  0x8f   :  { %v238_v60 = vsel %vm228_vm7, nan, %v237_v58  ;;  %v393_v31 = vsel %vm228_vm7, nan, %v392_v59 }
  0x90   :  { %v394_v61 = vsub.f32 1.0, %v238_v60  ;;  %v404_v62 = vsub.f32 0.0, %v393_v31  ;;  %v411_v18 = vmul.f32 %v393_v31, %v1085_v20  ;;  %v416_v63 = vmul.f32 %v393_v31, %v1087_v21 }
  0x91   :  { %v435_v10 = vmul.f32 %v393_v31, %v1083_v19 }
  0x92   :  { %v401_v0 = vmul.f32 %v400_v11, %v394_v61  ;;  %v405_v2 = vmul.f32 %v404_v62, %v1087_v21  ;;  %v406_v3 = vmul.f32 %v394_v61, %v1083_v19  ;;  %v421_v4 = vmul.f32 %v420_v13, %v394_v61 }
  0x93   :  { %v425_v6 = vmul.f32 %v404_v62, %v1083_v19  ;;  %v426_v7 = vmul.f32 %v394_v61, %v1085_v20  ;;  %v431_v9 = vmul.f32 %v404_v62, %v1085_v20  ;;  %v440_v13 = vmul.f32 %v439_v17, %v394_v61 }
  0x94   :  { %v402_v49 = vadd.f32 1.0, %v401_v0  ;;  %v407_v11 = vmul.f32 %v406_v3, %v1085_v20  ;;  %v412_v12 = vmul.f32 %v406_v3, %v1087_v21  ;;  %v422_v14 = vadd.f32 1.0, %v421_v4 }
  0x95   :  { %v427_v1 = vmul.f32 %v426_v7, %v1087_v21  ;;  %v441_v5 = vadd.f32 1.0, %v440_v13  ;;  %v473_v17 = vstv %s1165_s29 }
  0x96   :  { %403 = vst [vmem:[#allocation2] sm:$0xff] %v402_v49  ;;  %v408_v19 = vadd.f32 %v407_v11, %v405_v2  ;;  %v413_v20 = vadd.f32 %v412_v12, %v411_v18  ;;  %v417_v15 = vadd.f32 %v416_v63, %v407_v11  ;;  %v432_v16 = vadd.f32 %v431_v9, %v412_v12 }
  0x97   :  { %424 = vst [vmem:[#allocation2 + $0x20] sm:$0xff] %v422_v14  ;;  %v428_v22 = vadd.f32 %v427_v1, %v425_v6  ;;  %v436_v21 = vadd.f32 %v435_v10, %v427_v1 }
  0x98   :  { %410 = vst [vmem:[#allocation2 + $0x8] sm:$0xff] %v408_v19 }
  0x99   :  { %415 = vst [vmem:[#allocation2 + $0x10] sm:$0xff] %v413_v20 }
  0x9a   :  { %419 = vst [vmem:[#allocation2 + $0x18] sm:$0xff] %v417_v15 }
  0x9b   :  { %430 = vst [vmem:[#allocation2 + $0x28] sm:$0xff] %v428_v22 }
  0x9c   :  { %434 = vst [vmem:[#allocation2 + $0x30] sm:$0xff] %v432_v16 }
  0x9d   :  { %v1227_v33 = vld [vmem:[#allocation2] sm:$0x1]  ;;  %438 = vst [vmem:[#allocation2 + $0x38] sm:$0xff] %v436_v21  ;;  %v1232_v24 = vld [vmem:[#allocation2 + $0x1] sm:$0x1] }
  0x9e   :  { %v1243_v38 = vld [vmem:[#allocation2 + $0x20] sm:$0x1]  ;;  %443 = vst [vmem:[#allocation2 + $0x40] sm:$0xff] %v441_v5  ;;  %v472_v39 = vmul.f32 %v471_v8, %v1227_v33  ;;  %v667_v40 = vmul.f32 %v666_v25, %v1227_v33  ;;  %v775_v41 = vmul.f32 %v1215_v27, %v1227_v33  ;;  %v1249_v42 = vld [vmem:[#allocation2 + $0x21] sm:$0x1]  ;;  %v1253_v44 = vmul.f32 %v1232_v24, %v1227_v33 }
  0x9f   :  { %v1255_v45 = vld [vmem:[#allocation2 + $0x8] sm:$0x1]  ;;  %v481_v46 = vmul.f32 %v473_v17, %v1243_v38  ;;  %v676_v47 = vmul.f32 %v668_v26, %v1243_v38  ;;  %v784_v48 = vmul.f32 %v1225_v32, %v1243_v38  ;;  %v1261_v50 = vld [vmem:[#allocation2 + $0x9] sm:$0x1]  ;;  %v1265_v52 = vmul.f32 %v1249_v42, %v1243_v38 }
  0xa0   :  { %v1267_v53 = vld [vmem:[#allocation2 + $0x10] sm:$0x1]  ;;  %v474_v51 = vmul.f32 %v473_v17, %v1255_v45  ;;  %v669_v54 = vmul.f32 %v668_v26, %v1255_v45  ;;  %v777_v55 = vmul.f32 %v1225_v32, %v1255_v45  ;;  %v1275_v56 = vmul.f32 %v1261_v50, %v1227_v33 }
  0xa1   :  { %v1277_v57 = vld [vmem:[#allocation2 + $0x18] sm:$0x1]  ;;  %v477_v58 = vmul.f32 %v476_v23, %v1267_v53  ;;  %v672_v59 = vmul.f32 %v671_v30, %v1267_v53  ;;  %v780_v60 = vmul.f32 %v1230_v34, %v1267_v53  ;;  %v513_v31 = vmul.f32 %v1249_v42, %v1255_v45 }
  0xa2   :  { %v1285_v61 = vld [vmem:[#allocation2 + $0x28] sm:$0x1]  ;;  %v475_v62 = vadd.f32 %v474_v51, %v472_v39  ;;  %v480_v18 = vmul.f32 %v471_v8, %v1277_v57  ;;  %v670_v63 = vadd.f32 %v669_v54, %v667_v40  ;;  %v675_v0 = vmul.f32 %v666_v25, %v1277_v57 }
  0xa3   :  { %v1289_v2 = vld [vmem:[#allocation2 + $0x30] sm:$0x1]  ;;  %v483_v3 = vmul.f32 %v476_v23, %v1285_v61  ;;  %v678_v4 = vmul.f32 %v671_v30, %v1285_v61  ;;  %v778_v6 = vadd.f32 %v777_v55, %v775_v41  ;;  %v783_v7 = vmul.f32 %v1215_v27, %v1277_v57  ;;  %v1323_v55 = vld [vmem:[#allocation2 + $0x11] sm:$0x1] }
  0xa4   :  { %v1295_v9 = vld [vmem:[#allocation2 + $0x38] sm:$0x1]  ;;  %v478_v10 = vadd.f32 %v477_v58, %v475_v62  ;;  %v482_v49 = vadd.f32 %v481_v46, %v480_v18  ;;  %v489_v11 = vmul.f32 %v471_v8, %v1289_v2  ;;  %v673_v12 = vadd.f32 %v672_v59, %v670_v63  ;;  %v501_v46 = vld [vmem:[#allocation2 + $0x19] sm:$0x1]  ;;  %v503_v18 = vld [vmem:[#allocation2 + $0x29] sm:$0x1] }
  0xa5   :  { %v1298_v14 = vld [vmem:[#allocation2 + $0x40] sm:$0x1]  ;;  %v490_v1 = vmul.f32 %v473_v17, %v1295_v9  ;;  %v677_v13 = vadd.f32 %v676_v47, %v675_v0  ;;  %v681_v19 = vmul.f32 %v666_v25, %v1289_v2  ;;  %v682_v20 = vmul.f32 %v668_v26, %v1295_v9  ;;  %v505_v58 = vld [vmem:[#allocation2 + $0x39] sm:$0x1]  ;;  %v1333_v63 = vld [vmem:[#allocation2 + $0x41] sm:$0x1] }
  0xa6   :  { %v1304_v15 = vadd.f32 %v478_v10, %v1155_v43  ;;  %v484_v16 = vadd.f32 %v483_v3, %v482_v49  ;;  %v492_v22 = vmul.f32 %v476_v23, %v1298_v14  ;;  %v1308_v21 = vadd.f32 %v673_v12, %v1155_v43  ;;  %v504_v23 = vld [vmem:[#allocation2 + $0x31] sm:$0x1] }
  0xa7   :  { %v491_v5 = vadd.f32 %v490_v1, %v489_v11  ;;  %v679_v8 = vadd.f32 %v678_v4, %v677_v13  ;;  %v683_v39 = vadd.f32 %v682_v20, %v681_v19  ;;  %v684_v40 = vmul.f32 %v671_v30, %v1298_v14 }
  0xa8   :  { %552 = vst [vmem:[#allocation10 + $0x1] sm:$0x1] %v1304_v15  ;;  %v1313_v17 = vadd.f32 %v1218_v28, %v484_v16  ;;  %v781_v25 = vadd.f32 %v780_v60, %v778_v6  ;;  %v785_v26 = vadd.f32 %v784_v48, %v783_v7  ;;  %v786_v41 = vmul.f32 %v1230_v34, %v1285_v61 }
  0xa9   :  { %v493_v47 = vadd.f32 %v492_v22, %v491_v5  ;;  %741 = vst [vmem:[#allocation10 + $0x4] sm:$0x1] %v1308_v21  ;;  %v1319_v51 = vadd.f32 %v679_v8, %v1218_v28  ;;  %v685_v54 = vadd.f32 %v684_v40, %v683_v39  ;;  %v789_v30 = vmul.f32 %v1215_v27, %v1289_v2 }
  0xaa   :  { %553 = vst [vmem:[#allocation10 + $0x9] sm:$0x1] %v1313_v17  ;;  %v1327_v48 = vadd.f32 %v781_v25, %v1155_v43  ;;  %v787_v59 = vadd.f32 %v786_v41, %v785_v26  ;;  %v790_v60 = vmul.f32 %v1225_v32, %v1295_v9  ;;  %v792_v62 = vmul.f32 %v1230_v34, %v1298_v14 }
  0xab   :  { %v1336_v27 = vadd.f32 %v1221_v29, %v493_v47  ;;  %742 = vst [vmem:[#allocation10 + $0xc] sm:$0x1] %v1319_v51  ;;  %v1340_v0 = vadd.f32 %v685_v54, %v1221_v29  ;;  %v508_v43 = vmul.f32 %v501_v46, %v1255_v45  ;;  %v510_v3 = vmul.f32 %v504_v23, %v1267_v53 }
  0xac   :  { %849 = vst [vmem:[#allocation10 + $0x6] sm:$0x1] %v1327_v48  ;;  %v1346_v32 = vadd.f32 %v787_v59, %v1218_v28  ;;  %v791_v34 = vadd.f32 %v790_v60, %v789_v30  ;;  %v514_v4 = vadd.f32 %v513_v31, %v1275_v56  ;;  %v515_v6 = vmul.f32 %v505_v58, %v1267_v53 }
  0xad   :  { %554 = vst [vmem:[#allocation10 + $0x11] sm:$0x1] %v1336_v27  ;;  %v509_v7 = vadd.f32 %v508_v43, %v1253_v44  ;;  %v517_v10 = vmul.f32 %v1323_v55, %v1227_v33  ;;  %v518_v49 = vmul.f32 %v503_v18, %v1255_v45  ;;  %v520_v11 = vmul.f32 %v1333_v63, %v1267_v53 }
  0xae   :  { %743 = vst [vmem:[#allocation10 + $0x14] sm:$0x1] %v1340_v0  ;;  %v793_v28 = vadd.f32 %v792_v62, %v791_v34  ;;  %v1358_v12 = vadd.f32 %v515_v6, %v514_v4  ;;  %v522_v56 = vmul.f32 %v1232_v24, %v1277_v57  ;;  %v523_v31 = vmul.f32 %v501_v46, %v1243_v38 }
  0xaf   :  { %850 = vst [vmem:[#allocation10 + $0xe] sm:$0x1] %v1346_v32  ;;  %v1364_v44 = vadd.f32 %v510_v3, %v509_v7  ;;  %v519_v1 = vadd.f32 %v518_v49, %v517_v10  ;;  %v525_v13 = vmul.f32 %v504_v23, %v1285_v61  ;;  %v527_v19 = vmul.f32 %v1261_v50, %v1277_v57  ;;  %v1416_v49 = vld [vmem:[#allocation2 + $0x1c] sm:$0x1] }
  0xb0   :  { %v1370_v20 = vadd.f32 %v793_v28, %v1221_v29  ;;  %v561_v16 = vmul.f32 %v1238_v36, %v1358_v12  ;;  %v524_v22 = vadd.f32 %v523_v31, %v522_v56  ;;  %v530_v5 = vmul.f32 %v505_v58, %v1285_v61 }
  0xb1   :  { %v1375_v8 = vadd.f32 %v520_v11, %v519_v1  ;;  %v559_v39 = vmul.f32 %v1235_v35, %v1364_v44  ;;  %v529_v40 = vadd.f32 %v1265_v52, %v527_v19  ;;  %v532_v25 = vmul.f32 %v1323_v55, %v1277_v57  ;;  %v1418_v11 = vld [vmem:[#allocation2 + $0x34] sm:$0x1]  ;;  %v1427_v1 = vld [vmem:[#allocation2 + $0xc] sm:$0x1] }
  0xb2   :  { %851 = vst [vmem:[#allocation10 + $0x16] sm:$0x1] %v1370_v20  ;;  %v1383_v29 = vadd.f32 %v525_v13, %v524_v22  ;;  %v533_v26 = vmul.f32 %v503_v18, %v1243_v38  ;;  %v535_v41 = vmul.f32 %v1333_v63, %v1285_v61  ;;  %v537_v47 = vmul.f32 %v1232_v24, %v1289_v2  ;;  %v1435_v19 = vld [vmem:[#allocation2 + $0x14] sm:$0x1] }
  0xb3   :  { %v562_v54 = vadd.f32 %v561_v16, %v559_v39  ;;  %v564_v30 = vmul.f32 %v1241_v37, %v1375_v8  ;;  %v1392_v52 = vadd.f32 %v530_v5, %v529_v40  ;;  %v538_v59 = vmul.f32 %v501_v46, %v1295_v9  ;;  %v1406_v46 = vld [vmem:[#allocation2 + $0x4] sm:$0x1]  ;;  %v1437_v16 = vld [vmem:[#allocation2 + $0x3c] sm:$0x1]  ;;  %v1446_v39 = vld [vmem:[#allocation2 + $0x2c] sm:$0x1] }
  0xb4   :  { %v534_v60 = vadd.f32 %v533_v26, %v532_v25  ;;  %v567_v62 = vmul.f32 %v1235_v35, %v1383_v29  ;;  %v540_v43 = vmul.f32 %v504_v23, %v1298_v14  ;;  %v542_v3 = vmul.f32 %v1261_v50, %v1289_v2 }
  0xb5   :  { %v565_v24 = vadd.f32 %v564_v30, %v562_v54  ;;  %v568_v34 = vmul.f32 %v1238_v36, %v1392_v52  ;;  %v539_v4 = vadd.f32 %v538_v59, %v537_v47  ;;  %v543_v6 = vmul.f32 %v1249_v42, %v1295_v9 }
  0xb6   :  { %v1410_v7 = vadd.f32 %v535_v41, %v534_v60  ;;  %v545_v23 = vmul.f32 %v505_v58, %v1298_v14  ;;  %v547_v50 = vmul.f32 %v1323_v55, %v1289_v2  ;;  %v548_v10 = vmul.f32 %v503_v18, %v1295_v9  ;;  %v1429_v58 = vld [vmem:[#allocation2 + $0x24] sm:$0x1] }
  0xb7   :  { %v1423_v42 = vadd.f32 %v565_v24, %v1304_v15  ;;  %v569_v28 = vadd.f32 %v568_v34, %v567_v62  ;;  %v1425_v56 = vadd.f32 %v540_v43, %v539_v4  ;;  %v544_v31 = vadd.f32 %v543_v6, %v542_v3  ;;  %v1454_v41 = vld [vmem:[#allocation2 + $0x44] sm:$0x1] }
  0xb8   :  { %v570_v55 = vmul.f32 %v1241_v37, %v1410_v7  ;;  %v549_v18 = vadd.f32 %v548_v10, %v547_v50  ;;  %v550_v13 = vmul.f32 %v1333_v63, %v1298_v14  ;;  %v696_v15 = vmul.f32 %v1406_v46, %v1227_v33 }
  0xb9   :  { %633 = vst [vmem:[#allocation10 + $0x2] sm:$0x1] %v1423_v42  ;;  %v1442_v22 = vadd.f32 %v545_v23, %v544_v31  ;;  %v573_v5 = vmul.f32 %v1235_v35, %v1425_v56  ;;  %v697_v40 = vmul.f32 %v1416_v49, %v1255_v45  ;;  %v699_v63 = vmul.f32 %v1418_v11, %v1267_v53 }
  0xba   :  { %v571_v25 = vadd.f32 %v570_v55, %v569_v28  ;;  %v1452_v26 = vadd.f32 %v550_v13, %v549_v18  ;;  %v701_v47 = vmul.f32 %v1427_v1, %v1227_v33  ;;  %v702_v35 = vmul.f32 %v1429_v58, %v1255_v45 }
  0xbb   :  { %v574_v54 = vmul.f32 %v1238_v36, %v1442_v22  ;;  %v698_v30 = vadd.f32 %v697_v40, %v696_v15  ;;  %v704_v59 = vmul.f32 %v1437_v16, %v1267_v53  ;;  %v706_v60 = vmul.f32 %v1435_v19, %v1227_v33 }
  0xbc   :  { %v1467_v62 = vadd.f32 %v571_v25, %v1313_v17  ;;  %v576_v43 = vmul.f32 %v1241_v37, %v1452_v26  ;;  %v703_v3 = vadd.f32 %v702_v35, %v701_v47  ;;  %v707_v24 = vmul.f32 %v1446_v39, %v1255_v45 }
  0xbd   :  { %v575_v34 = vadd.f32 %v574_v54, %v573_v5  ;;  %v700_v36 = vadd.f32 %v699_v63, %v698_v30  ;;  %v709_v4 = vmul.f32 %v1454_v41, %v1267_v53  ;;  %v1476_v6 = vstv %s1400_s13 }
  0xbe   :  { %634 = vst [vmem:[#allocation10 + $0xa] sm:$0x1] %v1467_v62  ;;  %v705_v23 = vadd.f32 %v704_v59, %v703_v3  ;;  %v708_v50 = vadd.f32 %v707_v24, %v706_v60  ;;  %v1480_v17 = vstv %s1408_s14  ;;  %v1483_v10 = vstv %s1420_s15 }
  0xbf   :  { %v577_v37 = vadd.f32 %v576_v43, %v575_v34  ;;  %v748_v28 = vmul.f32 %v1476_v6, %v700_v36  ;;  %v711_v31 = vmul.f32 %v1406_v46, %v1277_v57  ;;  %v712_v55 = vmul.f32 %v1416_v49, %v1243_v38 }
  0xc0   :  { %v710_v18 = vadd.f32 %v709_v4, %v708_v50  ;;  %v750_v13 = vmul.f32 %v1480_v17, %v705_v23  ;;  %v714_v15 = vmul.f32 %v1418_v11, %v1285_v61  ;;  %v716_v5 = vmul.f32 %v1427_v1, %v1277_v57 }
  0xc1   :  { %v1496_v40 = vadd.f32 %v577_v37, %v1336_v27  ;;  %v713_v63 = vadd.f32 %v712_v55, %v711_v31  ;;  %v717_v25 = vmul.f32 %v1429_v58, %v1243_v38  ;;  %v719_v47 = vmul.f32 %v1437_v16, %v1285_v61 }
  0xc2   :  { %v751_v35 = vadd.f32 %v750_v13, %v748_v28  ;;  %v753_v54 = vmul.f32 %v1483_v10, %v710_v18  ;;  %v721_v30 = vmul.f32 %v1435_v19, %v1277_v57  ;;  %v722_v59 = vmul.f32 %v1446_v39, %v1243_v38  ;;  %v1530_v18 = vld [vmem:[#allocation2 + $0x1e] sm:$0x1] }
  0xc3   :  { %635 = vst [vmem:[#allocation10 + $0x12] sm:$0x1] %v1496_v40  ;;  %v715_v27 = vadd.f32 %v714_v15, %v713_v63  ;;  %v718_v60 = vadd.f32 %v717_v25, %v716_v5  ;;  %v724_v43 = vmul.f32 %v1454_v41, %v1285_v61  ;;  %v726_v3 = vmul.f32 %v1406_v46, %v1289_v2  ;;  %v1523_v46 = vld [vmem:[#allocation2 + $0x6] sm:$0x1]  ;;  %v1539_v5 = vld [vmem:[#allocation2 + $0xe] sm:$0x1] }
  0xc4   :  { %v754_v24 = vadd.f32 %v753_v54, %v751_v35  ;;  %v723_v34 = vadd.f32 %v722_v59, %v721_v30  ;;  %v727_v36 = vmul.f32 %v1416_v49, %v1295_v9  ;;  %v729_v4 = vmul.f32 %v1418_v11, %v1298_v14  ;;  %v801_v63 = vld [vmem:[#allocation2 + $0x36] sm:$0x1] }
  0xc5   :  { %v720_v23 = vadd.f32 %v719_v47, %v718_v60  ;;  %v756_v50 = vmul.f32 %v1476_v6, %v715_v27  ;;  %v731_v37 = vmul.f32 %v1427_v1, %v1289_v2  ;;  %v732_v28 = vmul.f32 %v1429_v58, %v1295_v9  ;;  %v1548_v59 = vld [vmem:[#allocation2 + $0x16] sm:$0x1]  ;;  %v802_v27 = vld [vmem:[#allocation2 + $0x3e] sm:$0x1] }
  0xc6   :  { %v755_v49 = vadd.f32 %v754_v24, %v1308_v21  ;;  %v725_v31 = vadd.f32 %v724_v43, %v723_v34  ;;  %v728_v55 = vadd.f32 %v727_v36, %v726_v3  ;;  %v734_v11 = vmul.f32 %v1437_v16, %v1298_v14  ;;  %v1541_v21 = vld [vmem:[#allocation2 + $0x26] sm:$0x1] }
  0xc7   :  { %v757_v1 = vmul.f32 %v1480_v17, %v720_v23  ;;  %v733_v13 = vadd.f32 %v732_v28, %v731_v37  ;;  %v736_v58 = vmul.f32 %v1435_v19, %v1289_v2  ;;  %v737_v15 = vmul.f32 %v1446_v39, %v1295_v9  ;;  %v1550_v39 = vld [vmem:[#allocation2 + $0x2e] sm:$0x1]  ;;  %v803_v23 = vld [vmem:[#allocation2 + $0x46] sm:$0x1] }
  0xc8   :  { %768 = vst [vmem:[#allocation10 + $0x5] sm:$0x1] %v755_v49  ;;  %v759_v16 = vmul.f32 %v1483_v10, %v725_v31  ;;  %v730_v25 = vadd.f32 %v729_v4, %v728_v55  ;;  %v739_v47 = vmul.f32 %v1454_v41, %v1298_v14  ;;  %v804_v35 = vmul.f32 %v1523_v46, %v1227_v33 }
  0xc9   :  { %v758_v54 = vadd.f32 %v757_v1, %v756_v50  ;;  %v735_v19 = vadd.f32 %v734_v11, %v733_v13  ;;  %v738_v30 = vadd.f32 %v737_v15, %v736_v58  ;;  %v805_v60 = vmul.f32 %v1530_v18, %v1255_v45 }
  0xca   :  { %v762_v43 = vmul.f32 %v1476_v6, %v730_v25  ;;  %v807_v3 = vmul.f32 %v801_v63, %v1267_v53  ;;  %v809_v41 = vmul.f32 %v1539_v5, %v1227_v33  ;;  %v810_v24 = vmul.f32 %v1541_v21, %v1255_v45 }
  0xcb   :  { %v760_v34 = vadd.f32 %v759_v16, %v758_v54  ;;  %v740_v36 = vadd.f32 %v739_v47, %v738_v30  ;;  %v763_v4 = vmul.f32 %v1480_v17, %v735_v19  ;;  %v806_v50 = vadd.f32 %v805_v60, %v804_v35 }
  0xcc   :  { %v811_v37 = vadd.f32 %v810_v24, %v809_v41  ;;  %v812_v6 = vmul.f32 %v802_v27, %v1267_v53  ;;  %v814_v28 = vmul.f32 %v1548_v59, %v1227_v33  ;;  %v815_v49 = vmul.f32 %v1550_v39, %v1255_v45 }
  0xcd   :  { %v761_v31 = vadd.f32 %v760_v34, %v1319_v51  ;;  %v764_v55 = vadd.f32 %v763_v4, %v762_v43  ;;  %v765_v11 = vmul.f32 %v1483_v10, %v740_v36  ;;  %v808_v1 = vadd.f32 %v807_v3, %v806_v50 }
  0xce   :  { %v813_v17 = vadd.f32 %v812_v6, %v811_v37  ;;  %v816_v13 = vadd.f32 %v815_v49, %v814_v28  ;;  %v817_v58 = vmul.f32 %v803_v23, %v1267_v53  ;;  %v855_v15 = vstv %s1516_s16 }
  0xcf   :  { %769 = vst [vmem:[#allocation10 + $0xd] sm:$0x1] %v761_v31  ;;  %v766_v16 = vadd.f32 %v765_v11, %v764_v55  ;;  %v856_v25 = vmul.f32 %v855_v15, %v808_v1  ;;  %v1571_v47 = vstv %s1525_s17  ;;  %v1574_v33 = vstv %s1532_s18 }
  0xd0   :  { %v818_v35 = vadd.f32 %v817_v58, %v816_v13  ;;  %v858_v45 = vmul.f32 %v1571_v47, %v813_v17  ;;  %v819_v51 = vmul.f32 %v1523_v46, %v1277_v57  ;;  %v820_v10 = vmul.f32 %v1530_v18, %v1243_v38  ;;  %v579_v13 = vld [vmem:[#allocation2 + $0x2] sm:$0x1]  ;;  %v582_v58 = vld [vmem:[#allocation2 + $0x1a] sm:$0x1] }
  0xd1   :  { %v767_v54 = vadd.f32 %v766_v16, %v1340_v0  ;;  %v822_v53 = vmul.f32 %v801_v63, %v1285_v61  ;;  %v824_v19 = vmul.f32 %v1539_v5, %v1277_v57  ;;  %v825_v30 = vmul.f32 %v1541_v21, %v1243_v38 }
  0xd2   :  { %v859_v60 = vadd.f32 %v858_v45, %v856_v25  ;;  %v861_v43 = vmul.f32 %v1574_v33, %v818_v35  ;;  %v821_v3 = vadd.f32 %v820_v10, %v819_v51  ;;  %v827_v41 = vmul.f32 %v802_v27, %v1285_v61  ;;  %v585_v35 = vld [vmem:[#allocation2 + $0x32] sm:$0x1]  ;;  %v580_v10 = vld [vmem:[#allocation2 + $0xa] sm:$0x1] }
  0xd3   :  { %770 = vst [vmem:[#allocation10 + $0x15] sm:$0x1] %v767_v54  ;;  %v826_v24 = vadd.f32 %v825_v30, %v824_v19  ;;  %v829_v34 = vmul.f32 %v1548_v59, %v1277_v57  ;;  %v830_v0 = vmul.f32 %v1550_v39, %v1243_v38  ;;  %v832_v36 = vmul.f32 %v803_v23, %v1285_v61  ;;  %v583_v54 = vld [vmem:[#allocation2 + $0x22] sm:$0x1] }
  0xd4   :  { %v862_v4 = vadd.f32 %v861_v43, %v859_v60  ;;  %v823_v50 = vadd.f32 %v822_v53, %v821_v3  ;;  %v834_v37 = vmul.f32 %v1523_v46, %v1289_v2  ;;  %v835_v6 = vmul.f32 %v1530_v18, %v1295_v9  ;;  %v584_v3 = vld [vmem:[#allocation2 + $0x2a] sm:$0x1] }
  0xd5   :  { %v828_v28 = vadd.f32 %v827_v41, %v826_v24  ;;  %v831_v49 = vadd.f32 %v830_v0, %v829_v34  ;;  %v837_v31 = vmul.f32 %v801_v63, %v1298_v14  ;;  %v839_v57 = vmul.f32 %v1539_v5, %v1289_v2  ;;  %v587_v34 = vld [vmem:[#allocation2 + $0x42] sm:$0x1] }
  0xd6   :  { %v863_v38 = vadd.f32 %v862_v4, %v1327_v48  ;;  %v864_v61 = vmul.f32 %v855_v15, %v823_v50  ;;  %v836_v55 = vadd.f32 %v835_v6, %v834_v37  ;;  %v840_v11 = vmul.f32 %v1541_v21, %v1295_v9 }
  0xd7   :  { %v833_v46 = vadd.f32 %v832_v36, %v831_v49  ;;  %v865_v18 = vmul.f32 %v1571_v47, %v828_v28  ;;  %v842_v1 = vmul.f32 %v802_v27, %v1298_v14  ;;  %v844_v63 = vmul.f32 %v1548_v59, %v1289_v2 }
  0xd8   :  { %876 = vst [vmem:[#allocation10 + $0x7] sm:$0x1] %v863_v38  ;;  %v838_v5 = vadd.f32 %v837_v31, %v836_v55  ;;  %v841_v48 = vadd.f32 %v840_v11, %v839_v57  ;;  %v845_v17 = vmul.f32 %v1550_v39, %v1295_v9  ;;  %v847_v21 = vmul.f32 %v803_v23, %v1298_v14  ;;  %v581_v39 = vld [vmem:[#allocation2 + $0x12] sm:$0x1]  ;;  %v586_v14 = vld [vmem:[#allocation2 + $0x3a] sm:$0x1] }
  0xd9   :  { %v866_v16 = vadd.f32 %v865_v18, %v864_v61  ;;  %v867_v25 = vmul.f32 %v1574_v33, %v833_v46  ;;  %v588_v27 = vmul.f32 %v579_v13, %v1364_v44  ;;  %v589_v2 = vmul.f32 %v582_v58, %v1358_v12 }
  0xda   :  { %v843_v59 = vadd.f32 %v842_v1, %v841_v48  ;;  %v846_v45 = vadd.f32 %v845_v17, %v844_v63  ;;  %v870_v51 = vmul.f32 %v855_v15, %v838_v5  ;;  %v591_v53 = vmul.f32 %v585_v35, %v1375_v8 }
  0xdb   :  { %v868_v9 = vadd.f32 %v867_v25, %v866_v16  ;;  %v590_v23 = vadd.f32 %v589_v2, %v588_v27  ;;  %v593_v19 = vmul.f32 %v580_v10, %v1364_v44  ;;  %v594_v30 = vmul.f32 %v583_v54, %v1358_v12 }
  0xdc   :  { %v848_v60 = vadd.f32 %v847_v21, %v846_v45  ;;  %v871_v43 = vmul.f32 %v1571_v47, %v843_v59  ;;  %v596_v15 = vmul.f32 %v586_v14, %v1375_v8  ;;  %v598_v41 = vmul.f32 %v581_v39, %v1364_v44 }
  0xdd   :  { %v869_v24 = vadd.f32 %v868_v9, %v1346_v32  ;;  %v592_v0 = vadd.f32 %v591_v53, %v590_v23  ;;  %v595_v36 = vadd.f32 %v594_v30, %v593_v19  ;;  %v599_v4 = vmul.f32 %v584_v3, %v1358_v12 }
  0xde   :  { %v872_v50 = vadd.f32 %v871_v43, %v870_v51  ;;  %v873_v37 = vmul.f32 %v1574_v33, %v848_v60  ;;  %v601_v6 = vmul.f32 %v587_v34, %v1375_v8  ;;  %v639_v47 = vstv %s1601_s19 }
  0xdf   :  { %877 = vst [vmem:[#allocation10 + $0xf] sm:$0x1] %v869_v24  ;;  %v597_v28 = vadd.f32 %v596_v15, %v595_v36  ;;  %v600_v49 = vadd.f32 %v599_v4, %v598_v41  ;;  %v640_v31 = vmul.f32 %v639_v47, %v592_v0  ;;  %v641_v57 = vstv %s1606_s22 }
  0xe0   :  { %v874_v44 = vadd.f32 %v873_v37, %v872_v50  ;;  %v644_v38 = vstv %s1612_s23  ;;  %v603_v32 = vmul.f32 %v579_v13, %v1383_v29  ;;  %v604_v61 = vmul.f32 %v582_v58, %v1392_v52 }
  0xe1   :  { %v602_v55 = vadd.f32 %v601_v6, %v600_v49  ;;  %v642_v11 = vmul.f32 %v641_v57, %v597_v28  ;;  %v606_v12 = vmul.f32 %v585_v35, %v1410_v7  ;;  %v608_v33 = vmul.f32 %v580_v10, %v1383_v29 }
  0xe2   :  { %v875_v8 = vadd.f32 %v874_v44, %v1370_v20  ;;  %v605_v46 = vadd.f32 %v604_v61, %v603_v32  ;;  %v609_v18 = vmul.f32 %v583_v54, %v1392_v52  ;;  %v611_v1 = vmul.f32 %v586_v14, %v1410_v7 }
  0xe3   :  { %v643_v63 = vadd.f32 %v642_v11, %v640_v31  ;;  %v645_v5 = vmul.f32 %v644_v38, %v602_v55  ;;  %v613_v48 = vmul.f32 %v581_v39, %v1383_v29  ;;  %v614_v17 = vmul.f32 %v584_v3, %v1392_v52 }
  0xe4   :  { %878 = vst [vmem:[#allocation10 + $0x17] sm:$0x1] %v875_v8  ;;  %v607_v21 = vadd.f32 %v606_v12, %v605_v46  ;;  %v610_v16 = vadd.f32 %v609_v18, %v608_v33  ;;  %v616_v25 = vmul.f32 %v587_v34, %v1410_v7  ;;  %v618_v27 = vmul.f32 %v579_v13, %v1425_v56 }
  0xe5   :  { %v646_v2 = vadd.f32 %v645_v5, %v643_v63  ;;  %v615_v20 = vadd.f32 %v614_v17, %v613_v48  ;;  %v619_v59 = vmul.f32 %v582_v58, %v1442_v22  ;;  %v621_v45 = vmul.f32 %v585_v35, %v1452_v26 }
  0xe6   :  { %v612_v51 = vadd.f32 %v611_v1, %v610_v16  ;;  %v648_v53 = vmul.f32 %v639_v47, %v607_v21  ;;  %v623_v9 = vmul.f32 %v580_v10, %v1425_v56  ;;  %v624_v29 = vmul.f32 %v583_v54, %v1442_v22 }
  0xe7   :  { %v647_v52 = vadd.f32 %v646_v2, %v1423_v42  ;;  %v617_v23 = vadd.f32 %v616_v25, %v615_v20  ;;  %v620_v19 = vadd.f32 %v619_v59, %v618_v27  ;;  %v626_v7 = vmul.f32 %v586_v14, %v1452_v26 }
  0xe8   :  { %v649_v30 = vmul.f32 %v641_v57, %v612_v51  ;;  %v625_v13 = vadd.f32 %v624_v29, %v623_v9  ;;  %v628_v60 = vmul.f32 %v581_v39, %v1425_v56  ;;  %v629_v58 = vmul.f32 %v584_v3, %v1442_v22 }
  0xe9   :  { %660 = vst [vmem:[#allocation10 + $0x3] sm:$0x1] %v647_v52  ;;  %v651_v35 = vmul.f32 %v644_v38, %v617_v23  ;;  %v622_v43 = vadd.f32 %v621_v45, %v620_v19  ;;  %v631_v54 = vmul.f32 %v587_v34, %v1452_v26 }
  0xea   :  { %v650_v15 = vadd.f32 %v649_v30, %v648_v53  ;;  %v627_v41 = vadd.f32 %v626_v7, %v625_v13  ;;  %v630_v10 = vadd.f32 %v629_v58, %v628_v60 }
  0xeb   :  { %v654_v24 = vmul.f32 %v639_v47, %v622_v43 }
  0xec   :  { %v652_v42 = vadd.f32 %v651_v35, %v650_v15  ;;  %v632_v0 = vadd.f32 %v631_v54, %v630_v10  ;;  %v655_v36 = vmul.f32 %v641_v57, %v627_v41 }
  0xee   :  { %v653_v14 = vadd.f32 %v652_v42, %v1467_v62  ;;  %v656_v4 = vadd.f32 %v655_v36, %v654_v24  ;;  %v657_v50 = vmul.f32 %v644_v38, %v632_v0 }
  0xf0   :  { %661 = vst [vmem:[#allocation10 + $0xb] sm:$0x1] %v653_v14  ;;  %v658_v56 = vadd.f32 %v657_v50, %v656_v4 }
  0xf2   :  { %v659_v22 = vadd.f32 %v658_v56, %v1496_v40 }
  0xf4   :  { %662 = vst [vmem:[#allocation10 + $0x13] sm:$0x1] %v659_v22 }
  0xf5   :  { %891 = dma.vmem_to_hbm [thread:$0]  %s884_s0, 384, %s886_s1, [#allocation5], %s1037_s20, %s1037_s20, %s1038_s21  }
  0xf6   :  { %1034 = dma.done.wait [#allocation5], 384  }
  0xf7   :  { %1035 = vsyncadd [#allocation5], 4294966912 }
  0xf8   :  { %896 = vsyncpa [#allocation4], 1 }
  0xf9   :  { %897 = vsyncpa [#allocation9], 1 }
  0xfa   :  { %898 = vsyncpa [#allocation5], 1 }
  0xfb   :  { %899 = vsyncpa [#allocation6], 1 }

</bundles_post_ra>
